<compile_context>
chip_gen: v7x
topology: tpu7x:2x2x1
jax: 0.10.0
libtpu: 0.0.40
codegen_flags: <defaults>
</compile_context>

<pallas_src>
from functools import partial

import jax
import jax.numpy as jnp
from jax.experimental import pallas as pl
from jax.experimental.pallas import tpu as pltpu


def _dense_delta_kernel(xT_ref, wT_ref, o_ref, *, Tt, T, theta, Y):
    """One grid step handles Tt consecutive time steps for one batch tile.

    xT_ref: (X, tn)  spike times, transposed, one batch tile (lane-dense over batch)
    wT_ref: (Y, X)   weight transposed (constant block index -> fetched once, resident)
    o_ref : (Tt, tn) output block (sublane = time, lane = batch)
    """
    ti = pl.program_id(1)                              # time-tile index (inner grid axis)
    t0 = (ti * Tt).astype(jnp.float32)

    x = xT_ref[...]                                    # (X, tn)  f32
    w = wT_ref[...]                                    # (Y, X)   f32 or bf16
    tn = x.shape[1]

    # Hoisted out of the time loop (JAX does not CSE broadcast_in_dim).
    row = jax.lax.broadcasted_iota(jnp.int32, (Y, tn), 0)
    sentinel = jnp.int32(Y)

    # Static unroll over the Tt time rows of this output block: one lane-dense
    # (Y, X) x (X, tn) MXU matmul + one static-row store per step.  No reshape or
    # sublane->lane relayout of the activation is ever materialized.
    for tt in range(Tt):
        t_val = t0 + float(tt)
        ai = jnp.maximum(t_val - x, 0.0)               # (X, tn) relu, f32 on the VPU
        vs = jnp.dot(w, ai.astype(w.dtype),
                     preferred_element_type=jnp.float32)   # (Y, tn) == Vs[t].T
        fired = vs > theta                             # strict >, matches torch
        # First y with fired==True (torch argmax over a 0/1 array returns the first max
        # index); if nothing fired, argmax of all-zeros is 0 -> same as picking index 0.
        first = jnp.min(jnp.where(fired, row, sentinel), axis=0, keepdims=True)  # (1, tn)
        idx = jnp.where(first == sentinel, jnp.int32(0), first) + 1
        o_ref[pl.ds(tt, 1), :] = jnp.minimum(idx, T).astype(jnp.float32)


def dense_delta_forward(x, weight, T=64, theta=1.0, *, block_t=16, block_n=None,
                        mxu_dtype=jnp.float32):
    """x: (N, in_features) f32 spike times; weight: (in_features, out_features).
    Returns (T+1, N) float32, matching torch _dense_delta.forward.

    mxu_dtype=jnp.bfloat16 runs the matmul at full MXU rate (f32 accumulation) and is
    worthwhile when out_features is large (>= ~64 on v6e/v7x, >= ~16 on v5e), but it can
    flip the argmax for Vs values within bf16 rounding of theta; default is exact f32.
    """
    N, X = x.shape
    Xw, Y = weight.shape
    assert X == Xw, (X, Xw)

    if T <= 0:
        # V reduces to the constant (theta + 1) row -> argmax 0 -> min(1, T) = 0.
        return jnp.zeros((1, N), jnp.float32)

    w_itemsize = 2 if mxu_dtype == jnp.bfloat16 else 4

    # ---- per-generation VMEM budget -------------------------------------------------
    try:
        vmem_cap = int(pltpu.get_tpu_info().vmem_capacity_bytes)
    except Exception:
        vmem_cap = 64 * 1024 * 1024          # conservative: v7x per-TensorCore capacity
    vmem_limit = min(64 * 1024 * 1024, (3 * vmem_cap) // 4)   # 64 MiB v5e/v6e, 48 MiB v7x
    budget = max(8 * 1024 * 1024, vmem_limit - 8 * 1024 * 1024)

    def _vmem_est(tt, bn):
        return (2 * X * bn * 4               # double-buffered xT batch tile
                + 2 * Y * X * w_itemsize     # resident weight (double-buffered)
                + 2 * tt * bn * 4            # double-buffered output block
                + (X + 4 * Y) * bn * 4)      # in-kernel ai / vs / iota / select temps

    # ---- tile sizes ------------------------------------------------------------------
    # Time tile (output sublanes): multiple of 8, capped to the padded T.
    Tt = max(8, 8 * (block_t // 8))
    Tt = min(Tt, 8 * pl.cdiv(T, 8))
    # Batch tile (output lanes): multiple of 128 so stores are lane-dense/unmasked;
    # grow up to 1024 while it fits the per-generation budget.
    if block_n is None:
        block_n = 128
        while block_n < 1024 and N > block_n and _vmem_est(Tt, 2 * block_n) <= budget:
            block_n *= 2
    assert block_n % 128 == 0, block_n
    while block_n > 128 and _vmem_est(Tt, block_n) > budget:
        block_n //= 2
    while Tt > 8 and _vmem_est(Tt, block_n) > budget:
        Tt -= 8

    Npad = pl.cdiv(N, block_n) * block_n
    Tpad = pl.cdiv(T, Tt) * Tt

    # ---- operand layout --------------------------------------------------------------
    x_f = jnp.asarray(x, jnp.float32)
    if Npad != N:
        x_f = jnp.pad(x_f, ((0, Npad - N), (0, 0)))    # padded batch columns sliced off
    xT = x_f.T                                         # (X, Npad)
    wT = jnp.asarray(weight, jnp.float32).T            # (Y, X)
    if mxu_dtype == jnp.bfloat16:
        wT = wT.astype(jnp.bfloat16)                   # wrapper-side cast: no per-step VPU cast

    cost = pl.CostEstimate(
        flops=2 * Y * X * T * N,
        transcendentals=0,
        bytes_accessed=X * Npad * 4 + Y * X * w_itemsize + Tpad * Npad * 4)

    out = pl.pallas_call(
        partial(_dense_delta_kernel, Tt=Tt, T=T, theta=float(theta), Y=Y),
        out_shape=jax.ShapeDtypeStruct((Tpad, Npad), jnp.float32),
        grid_spec=pltpu.PrefetchScalarGridSpec(
            num_scalar_prefetch=0,
            # Batch outer / time inner: the xT block index is constant across the inner
            # time loop, so each batch tile is fetched from HBM exactly once.
            grid=(Npad // block_n, Tpad // Tt),
            in_specs=[
                pl.BlockSpec((X, block_n), lambda ni, ti: (0, ni)),  # batch tile of xT
                # Constant block index: Pallas fetches wT once and keeps it resident.
                pl.BlockSpec((Y, X), lambda ni, ti: (0, 0)),
            ],
            out_specs=pl.BlockSpec((Tt, block_n), lambda ni, ti: (ti, ni)),
        ),
        compiler_params=pltpu.CompilerParams(
            # Batch tiles shard across v7x's 2 TensorCores; time stays sequential per core.
            dimension_semantics=("parallel", "arbitrary"),
            vmem_limit_bytes=vmem_limit),
        cost_estimate=cost,
    )(xT, wT)

    # t == T slice of V is (theta + 1) > theta everywhere -> argmax 0 -> min(1, T).
    # Written here instead of spending a grid step on a constant store.
    body = out[:T, :N]
    last = jnp.full((1, N), float(min(1, T)), jnp.float32)
    return jnp.concatenate([body, last], axis=0)


def dense_delta_reference(x, weight, T=64, theta=1.0):
    """Pure-JAX mirror of the torch forward for validation."""
    t_series = jnp.linspace(0.0, T - 1, T).astype(jnp.float32)
    ai = jax.nn.relu(t_series[:, None, None] - x[None, :, :])          # (T, N, X)
    vs = jnp.matmul(ai, weight[None, :, :])                            # (T, N, Y)
    V = jnp.concatenate([vs, jnp.ones_like(vs[0:1]) * theta + 1], 0)   # (T+1, N, Y)
    out = jnp.argmax((V > theta).astype(jnp.float32), axis=-1) + 1
    return jnp.minimum(out, T).astype(jnp.float32)


if __name__ == "__main__":
    # Small deterministic config: batch N=4, in_features=32, out_features=16, T=16
    N, in_features, out_features, T, theta = 4, 32, 16, 16, 1.0

    key = jax.random.PRNGKey(0)
    kx, kw = jax.random.split(key)
    # spike times in [0, T)
    x = jax.random.uniform(kx, (N, in_features), jnp.float32, 0.0, float(T))
    # module inits weight to zeros (trivial output) -> use deterministic random
    # values instead so the kernel path is exercised non-trivially.
    weight = 0.2 * jax.random.normal(kw, (in_features, out_features), jnp.float32)

    out = dense_delta_forward(x, weight, T=T, theta=theta)
    out = jax.block_until_ready(out)

    ref = dense_delta_reference(x, weight, T=T, theta=theta)
    assert out.shape == (T + 1, N), out.shape
    assert jnp.allclose(out, ref), (out, ref)

    print("KERNEL_OK")
</pallas_src>

<mosaic_0001>
module attributes {stable_mosaic.version = 11 : i64} {
  func.func @_dense_delta_kernel(%arg0: i32, %arg1: i32, %arg2: memref<32x128xf32, #tpu.memory_space<vmem>>, %arg3: memref<16x32xf32, #tpu.memory_space<vmem>>, %arg4: memref<16x128xf32, #tpu.memory_space<vmem>>) attributes {dimension_semantics = [#tpu.dimension_semantics<parallel>, #tpu.dimension_semantics<arbitrary>], iteration_bounds = array<i64: 1, 1>, scalar_prefetch = 0 : i64, scratch_operands = 0 : i64, tpu.core_type = #tpu.core_type<tc>, window_params = [{transform_indices = @transform_0, window_bounds = array<i64: 32, 128>}, {pipeline_mode = #tpu.pipeline_mode<synchronous>, transform_indices = @transform_1, window_bounds = array<i64: 16, 32>}, {transform_indices = @transform_2, window_bounds = array<i64: 16, 128>}]} {
    %c16_i32 = arith.constant 16 : i32
    %0 = arith.muli %arg1, %c16_i32 : i32
    %1 = arith.sitofp %0 : i32 to f32
    %c0 = arith.constant 0 : index
    %c0_0 = arith.constant 0 : index
    %2 = vector.load %arg2[%c0, %c0_0] : memref<32x128xf32, #tpu.memory_space<vmem>>, vector<32x128xf32>
    %c0_1 = arith.constant 0 : index
    %c0_2 = arith.constant 0 : index
    %3 = vector.load %arg3[%c0_1, %c0_2] : memref<16x32xf32, #tpu.memory_space<vmem>>, vector<16x32xf32>
    %4 = tpu.iota {dimensions = array<i32: 0>} : vector<16x128xi32>
    %cst = arith.constant 0.000000e+00 : f32
    %5 = arith.addf %1, %cst : f32
    %6 = vector.broadcast %5 : f32 to vector<32x128xf32>
    %7 = arith.subf %6, %2 : vector<32x128xf32>
    %cst_3 = arith.constant 0.000000e+00 : f32
    %8 = vector.broadcast %cst_3 : f32 to vector<32x128xf32>
    %9 = arith.maximumf %7, %8 : vector<32x128xf32>
    %cst_4 = arith.constant dense<0.000000e+00> : vector<16x128xf32>
    %10 = tpu.matmul %3, %9, %cst_4 {dimension_numbers = #tpu.dot_dimension_numbers<[1], [0], [0], [1], [0, 0, 1, 1], [], []>} : vector<16x32xf32>, vector<32x128xf32>, vector<16x128xf32> -> vector<16x128xf32>
    %cst_5 = arith.constant 1.000000e+00 : f32
    %11 = vector.broadcast %cst_5 : f32 to vector<16x128xf32>
    %12 = arith.cmpf ogt, %10, %11 : vector<16x128xf32>
    %c16_i32_6 = arith.constant 16 : i32
    %13 = vector.broadcast %c16_i32_6 : i32 to vector<16x128xi32>
    %14 = arith.select %12, %4, %13 : vector<16x128xi1>, vector<16x128xi32>
    %cst_7 = arith.constant dense<2147483647> : vector<128xi32>
    %15 = vector.multi_reduction <minsi>, %14, %cst_7 [0] : vector<16x128xi32> to vector<128xi32>
    %16 = vector.shape_cast %15 : vector<128xi32> to vector<1x128xi32>
    %c16_i32_8 = arith.constant 16 : i32
    %17 = vector.broadcast %c16_i32_8 : i32 to vector<1x128xi32>
    %18 = arith.cmpi eq, %16, %17 : vector<1x128xi32>
    %c0_i32 = arith.constant 0 : i32
    %19 = vector.broadcast %c0_i32 : i32 to vector<1x128xi32>
    %20 = arith.select %18, %19, %16 : vector<1x128xi1>, vector<1x128xi32>
    %c1_i32 = arith.constant 1 : i32
    %21 = vector.broadcast %c1_i32 : i32 to vector<1x128xi32>
    %22 = arith.addi %20, %21 : vector<1x128xi32>
    %c16_i32_9 = arith.constant 16 : i32
    %23 = vector.broadcast %c16_i32_9 : i32 to vector<1x128xi32>
    %24 = arith.minsi %22, %23 : vector<1x128xi32>
    %25 = arith.sitofp %24 : vector<1x128xi32> to vector<1x128xf32>
    %c0_10 = arith.constant 0 : index
    %c0_11 = arith.constant 0 : index
    %26 = vector.load %arg4[%c0_10, %c0_11] : memref<16x128xf32, #tpu.memory_space<vmem>>, vector<1x128xf32>
    tpu.vector_store %arg4[%c0_10, %c0_11], %25 {strides = array<i32>} : memref<16x128xf32, #tpu.memory_space<vmem>>, vector<1x128xf32>,
    %cst_12 = arith.constant 1.000000e+00 : f32
    %27 = arith.addf %1, %cst_12 : f32
    %28 = vector.broadcast %27 : f32 to vector<32x128xf32>
    %29 = arith.subf %28, %2 : vector<32x128xf32>
    %cst_13 = arith.constant 0.000000e+00 : f32
    %30 = vector.broadcast %cst_13 : f32 to vector<32x128xf32>
    %31 = arith.maximumf %29, %30 : vector<32x128xf32>
    %cst_14 = arith.constant dense<0.000000e+00> : vector<16x128xf32>
    %32 = tpu.matmul %3, %31, %cst_14 {dimension_numbers = #tpu.dot_dimension_numbers<[1], [0], [0], [1], [0, 0, 1, 1], [], []>} : vector<16x32xf32>, vector<32x128xf32>, vector<16x128xf32> -> vector<16x128xf32>
    %cst_15 = arith.constant 1.000000e+00 : f32
    %33 = vector.broadcast %cst_15 : f32 to vector<16x128xf32>
    %34 = arith.cmpf ogt, %32, %33 : vector<16x128xf32>
    %c16_i32_16 = arith.constant 16 : i32
    %35 = vector.broadcast %c16_i32_16 : i32 to vector<16x128xi32>
    %36 = arith.select %34, %4, %35 : vector<16x128xi1>, vector<16x128xi32>
    %cst_17 = arith.constant dense<2147483647> : vector<128xi32>
    %37 = vector.multi_reduction <minsi>, %36, %cst_17 [0] : vector<16x128xi32> to vector<128xi32>
    %38 = vector.shape_cast %37 : vector<128xi32> to vector<1x128xi32>
    %c16_i32_18 = arith.constant 16 : i32
    %39 = vector.broadcast %c16_i32_18 : i32 to vector<1x128xi32>
    %40 = arith.cmpi eq, %38, %39 : vector<1x128xi32>
    %c0_i32_19 = arith.constant 0 : i32
    %41 = vector.broadcast %c0_i32_19 : i32 to vector<1x128xi32>
    %42 = arith.select %40, %41, %38 : vector<1x128xi1>, vector<1x128xi32>
    %c1_i32_20 = arith.constant 1 : i32
    %43 = vector.broadcast %c1_i32_20 : i32 to vector<1x128xi32>
    %44 = arith.addi %42, %43 : vector<1x128xi32>
    %c16_i32_21 = arith.constant 16 : i32
    %45 = vector.broadcast %c16_i32_21 : i32 to vector<1x128xi32>
    %46 = arith.minsi %44, %45 : vector<1x128xi32>
    %47 = arith.sitofp %46 : vector<1x128xi32> to vector<1x128xf32>
    %c1 = arith.constant 1 : index
    %c0_22 = arith.constant 0 : index
    %48 = vector.load %arg4[%c1, %c0_22] : memref<16x128xf32, #tpu.memory_space<vmem>>, vector<1x128xf32>
    tpu.vector_store %arg4[%c1, %c0_22], %47 {strides = array<i32>} : memref<16x128xf32, #tpu.memory_space<vmem>>, vector<1x128xf32>,
    %cst_23 = arith.constant 2.000000e+00 : f32
    %49 = arith.addf %1, %cst_23 : f32
    %50 = vector.broadcast %49 : f32 to vector<32x128xf32>
    %51 = arith.subf %50, %2 : vector<32x128xf32>
    %cst_24 = arith.constant 0.000000e+00 : f32
    %52 = vector.broadcast %cst_24 : f32 to vector<32x128xf32>
    %53 = arith.maximumf %51, %52 : vector<32x128xf32>
    %cst_25 = arith.constant dense<0.000000e+00> : vector<16x128xf32>
    %54 = tpu.matmul %3, %53, %cst_25 {dimension_numbers = #tpu.dot_dimension_numbers<[1], [0], [0], [1], [0, 0, 1, 1], [], []>} : vector<16x32xf32>, vector<32x128xf32>, vector<16x128xf32> -> vector<16x128xf32>
    %cst_26 = arith.constant 1.000000e+00 : f32
    %55 = vector.broadcast %cst_26 : f32 to vector<16x128xf32>
    %56 = arith.cmpf ogt, %54, %55 : vector<16x128xf32>
    %c16_i32_27 = arith.constant 16 : i32
    %57 = vector.broadcast %c16_i32_27 : i32 to vector<16x128xi32>
    %58 = arith.select %56, %4, %57 : vector<16x128xi1>, vector<16x128xi32>
    %cst_28 = arith.constant dense<2147483647> : vector<128xi32>
    %59 = vector.multi_reduction <minsi>, %58, %cst_28 [0] : vector<16x128xi32> to vector<128xi32>
    %60 = vector.shape_cast %59 : vector<128xi32> to vector<1x128xi32>
    %c16_i32_29 = arith.constant 16 : i32
    %61 = vector.broadcast %c16_i32_29 : i32 to vector<1x128xi32>
    %62 = arith.cmpi eq, %60, %61 : vector<1x128xi32>
    %c0_i32_30 = arith.constant 0 : i32
    %63 = vector.broadcast %c0_i32_30 : i32 to vector<1x128xi32>
    %64 = arith.select %62, %63, %60 : vector<1x128xi1>, vector<1x128xi32>
    %c1_i32_31 = arith.constant 1 : i32
    %65 = vector.broadcast %c1_i32_31 : i32 to vector<1x128xi32>
    %66 = arith.addi %64, %65 : vector<1x128xi32>
    %c16_i32_32 = arith.constant 16 : i32
    %67 = vector.broadcast %c16_i32_32 : i32 to vector<1x128xi32>
    %68 = arith.minsi %66, %67 : vector<1x128xi32>
    %69 = arith.sitofp %68 : vector<1x128xi32> to vector<1x128xf32>
    %c2 = arith.constant 2 : index
    %c0_33 = arith.constant 0 : index
    %70 = vector.load %arg4[%c2, %c0_33] : memref<16x128xf32, #tpu.memory_space<vmem>>, vector<1x128xf32>
    tpu.vector_store %arg4[%c2, %c0_33], %69 {strides = array<i32>} : memref<16x128xf32, #tpu.memory_space<vmem>>, vector<1x128xf32>,
    %cst_34 = arith.constant 3.000000e+00 : f32
    %71 = arith.addf %1, %cst_34 : f32
    %72 = vector.broadcast %71 : f32 to vector<32x128xf32>
    %73 = arith.subf %72, %2 : vector<32x128xf32>
    %cst_35 = arith.constant 0.000000e+00 : f32
    %74 = vector.broadcast %cst_35 : f32 to vector<32x128xf32>
    %75 = arith.maximumf %73, %74 : vector<32x128xf32>
    %cst_36 = arith.constant dense<0.000000e+00> : vector<16x128xf32>
    %76 = tpu.matmul %3, %75, %cst_36 {dimension_numbers = #tpu.dot_dimension_numbers<[1], [0], [0], [1], [0, 0, 1, 1], [], []>} : vector<16x32xf32>, vector<32x128xf32>, vector<16x128xf32> -> vector<16x128xf32>
    %cst_37 = arith.constant 1.000000e+00 : f32
    %77 = vector.broadcast %cst_37 : f32 to vector<16x128xf32>
    %78 = arith.cmpf ogt, %76, %77 : vector<16x128xf32>
    %c16_i32_38 = arith.constant 16 : i32
    %79 = vector.broadcast %c16_i32_38 : i32 to vector<16x128xi32>
    %80 = arith.select %78, %4, %79 : vector<16x128xi1>, vector<16x128xi32>
    %cst_39 = arith.constant dense<2147483647> : vector<128xi32>
    %81 = vector.multi_reduction <minsi>, %80, %cst_39 [0] : vector<16x128xi32> to vector<128xi32>
    %82 = vector.shape_cast %81 : vector<128xi32> to vector<1x128xi32>
    %c16_i32_40 = arith.constant 16 : i32
    %83 = vector.broadcast %c16_i32_40 : i32 to vector<1x128xi32>
    %84 = arith.cmpi eq, %82, %83 : vector<1x128xi32>
    %c0_i32_41 = arith.constant 0 : i32
    %85 = vector.broadcast %c0_i32_41 : i32 to vector<1x128xi32>
    %86 = arith.select %84, %85, %82 : vector<1x128xi1>, vector<1x128xi32>
    %c1_i32_42 = arith.constant 1 : i32
    %87 = vector.broadcast %c1_i32_42 : i32 to vector<1x128xi32>
    %88 = arith.addi %86, %87 : vector<1x128xi32>
    %c16_i32_43 = arith.constant 16 : i32
    %89 = vector.broadcast %c16_i32_43 : i32 to vector<1x128xi32>
    %90 = arith.minsi %88, %89 : vector<1x128xi32>
    %91 = arith.sitofp %90 : vector<1x128xi32> to vector<1x128xf32>
    %c3 = arith.constant 3 : index
    %c0_44 = arith.constant 0 : index
    %92 = vector.load %arg4[%c3, %c0_44] : memref<16x128xf32, #tpu.memory_space<vmem>>, vector<1x128xf32>
    tpu.vector_store %arg4[%c3, %c0_44], %91 {strides = array<i32>} : memref<16x128xf32, #tpu.memory_space<vmem>>, vector<1x128xf32>,
    %cst_45 = arith.constant 4.000000e+00 : f32
    %93 = arith.addf %1, %cst_45 : f32
    %94 = vector.broadcast %93 : f32 to vector<32x128xf32>
    %95 = arith.subf %94, %2 : vector<32x128xf32>
    %cst_46 = arith.constant 0.000000e+00 : f32
    %96 = vector.broadcast %cst_46 : f32 to vector<32x128xf32>
    %97 = arith.maximumf %95, %96 : vector<32x128xf32>
    %cst_47 = arith.constant dense<0.000000e+00> : vector<16x128xf32>
    %98 = tpu.matmul %3, %97, %cst_47 {dimension_numbers = #tpu.dot_dimension_numbers<[1], [0], [0], [1], [0, 0, 1, 1], [], []>} : vector<16x32xf32>, vector<32x128xf32>, vector<16x128xf32> -> vector<16x128xf32>
    %cst_48 = arith.constant 1.000000e+00 : f32
    %99 = vector.broadcast %cst_48 : f32 to vector<16x128xf32>
    %100 = arith.cmpf ogt, %98, %99 : vector<16x128xf32>
    %c16_i32_49 = arith.constant 16 : i32
    %101 = vector.broadcast %c16_i32_49 : i32 to vector<16x128xi32>
    %102 = arith.select %100, %4, %101 : vector<16x128xi1>, vector<16x128xi32>
    %cst_50 = arith.constant dense<2147483647> : vector<128xi32>
    %103 = vector.multi_reduction <minsi>, %102, %cst_50 [0] : vector<16x128xi32> to vector<128xi32>
    %104 = vector.shape_cast %103 : vector<128xi32> to vector<1x128xi32>
    %c16_i32_51 = arith.constant 16 : i32
    %105 = vector.broadcast %c16_i32_51 : i32 to vector<1x128xi32>
    %106 = arith.cmpi eq, %104, %105 : vector<1x128xi32>
    %c0_i32_52 = arith.constant 0 : i32
    %107 = vector.broadcast %c0_i32_52 : i32 to vector<1x128xi32>
    %108 = arith.select %106, %107, %104 : vector<1x128xi1>, vector<1x128xi32>
    %c1_i32_53 = arith.constant 1 : i32
    %109 = vector.broadcast %c1_i32_53 : i32 to vector<1x128xi32>
    %110 = arith.addi %108, %109 : vector<1x128xi32>
    %c16_i32_54 = arith.constant 16 : i32
    %111 = vector.broadcast %c16_i32_54 : i32 to vector<1x128xi32>
    %112 = arith.minsi %110, %111 : vector<1x128xi32>
    %113 = arith.sitofp %112 : vector<1x128xi32> to vector<1x128xf32>
    %c4 = arith.constant 4 : index
    %c0_55 = arith.constant 0 : index
    %114 = vector.load %arg4[%c4, %c0_55] : memref<16x128xf32, #tpu.memory_space<vmem>>, vector<1x128xf32>
    tpu.vector_store %arg4[%c4, %c0_55], %113 {strides = array<i32>} : memref<16x128xf32, #tpu.memory_space<vmem>>, vector<1x128xf32>,
    %cst_56 = arith.constant 5.000000e+00 : f32
    %115 = arith.addf %1, %cst_56 : f32
    %116 = vector.broadcast %115 : f32 to vector<32x128xf32>
    %117 = arith.subf %116, %2 : vector<32x128xf32>
    %cst_57 = arith.constant 0.000000e+00 : f32
    %118 = vector.broadcast %cst_57 : f32 to vector<32x128xf32>
    %119 = arith.maximumf %117, %118 : vector<32x128xf32>
    %cst_58 = arith.constant dense<0.000000e+00> : vector<16x128xf32>
    %120 = tpu.matmul %3, %119, %cst_58 {dimension_numbers = #tpu.dot_dimension_numbers<[1], [0], [0], [1], [0, 0, 1, 1], [], []>} : vector<16x32xf32>, vector<32x128xf32>, vector<16x128xf32> -> vector<16x128xf32>
    %cst_59 = arith.constant 1.000000e+00 : f32
    %121 = vector.broadcast %cst_59 : f32 to vector<16x128xf32>
    %122 = arith.cmpf ogt, %120, %121 : vector<16x128xf32>
    %c16_i32_60 = arith.constant 16 : i32
    %123 = vector.broadcast %c16_i32_60 : i32 to vector<16x128xi32>
    %124 = arith.select %122, %4, %123 : vector<16x128xi1>, vector<16x128xi32>
    %cst_61 = arith.constant dense<2147483647> : vector<128xi32>
    %125 = vector.multi_reduction <minsi>, %124, %cst_61 [0] : vector<16x128xi32> to vector<128xi32>
    %126 = vector.shape_cast %125 : vector<128xi32> to vector<1x128xi32>
    %c16_i32_62 = arith.constant 16 : i32
    %127 = vector.broadcast %c16_i32_62 : i32 to vector<1x128xi32>
    %128 = arith.cmpi eq, %126, %127 : vector<1x128xi32>
    %c0_i32_63 = arith.constant 0 : i32
    %129 = vector.broadcast %c0_i32_63 : i32 to vector<1x128xi32>
    %130 = arith.select %128, %129, %126 : vector<1x128xi1>, vector<1x128xi32>
    %c1_i32_64 = arith.constant 1 : i32
    %131 = vector.broadcast %c1_i32_64 : i32 to vector<1x128xi32>
    %132 = arith.addi %130, %131 : vector<1x128xi32>
    %c16_i32_65 = arith.constant 16 : i32
    %133 = vector.broadcast %c16_i32_65 : i32 to vector<1x128xi32>
    %134 = arith.minsi %132, %133 : vector<1x128xi32>
    %135 = arith.sitofp %134 : vector<1x128xi32> to vector<1x128xf32>
    %c5 = arith.constant 5 : index
    %c0_66 = arith.constant 0 : index
    %136 = vector.load %arg4[%c5, %c0_66] : memref<16x128xf32, #tpu.memory_space<vmem>>, vector<1x128xf32>
    tpu.vector_store %arg4[%c5, %c0_66], %135 {strides = array<i32>} : memref<16x128xf32, #tpu.memory_space<vmem>>, vector<1x128xf32>,
    %cst_67 = arith.constant 6.000000e+00 : f32
    %137 = arith.addf %1, %cst_67 : f32
    %138 = vector.broadcast %137 : f32 to vector<32x128xf32>
    %139 = arith.subf %138, %2 : vector<32x128xf32>
    %cst_68 = arith.constant 0.000000e+00 : f32
    %140 = vector.broadcast %cst_68 : f32 to vector<32x128xf32>
    %141 = arith.maximumf %139, %140 : vector<32x128xf32>
    %cst_69 = arith.constant dense<0.000000e+00> : vector<16x128xf32>
    %142 = tpu.matmul %3, %141, %cst_69 {dimension_numbers = #tpu.dot_dimension_numbers<[1], [0], [0], [1], [0, 0, 1, 1], [], []>} : vector<16x32xf32>, vector<32x128xf32>, vector<16x128xf32> -> vector<16x128xf32>
    %cst_70 = arith.constant 1.000000e+00 : f32
    %143 = vector.broadcast %cst_70 : f32 to vector<16x128xf32>
    %144 = arith.cmpf ogt, %142, %143 : vector<16x128xf32>
    %c16_i32_71 = arith.constant 16 : i32
    %145 = vector.broadcast %c16_i32_71 : i32 to vector<16x128xi32>
    %146 = arith.select %144, %4, %145 : vector<16x128xi1>, vector<16x128xi32>
    %cst_72 = arith.constant dense<2147483647> : vector<128xi32>
    %147 = vector.multi_reduction <minsi>, %146, %cst_72 [0] : vector<16x128xi32> to vector<128xi32>
    %148 = vector.shape_cast %147 : vector<128xi32> to vector<1x128xi32>
    %c16_i32_73 = arith.constant 16 : i32
    %149 = vector.broadcast %c16_i32_73 : i32 to vector<1x128xi32>
    %150 = arith.cmpi eq, %148, %149 : vector<1x128xi32>
    %c0_i32_74 = arith.constant 0 : i32
    %151 = vector.broadcast %c0_i32_74 : i32 to vector<1x128xi32>
    %152 = arith.select %150, %151, %148 : vector<1x128xi1>, vector<1x128xi32>
    %c1_i32_75 = arith.constant 1 : i32
    %153 = vector.broadcast %c1_i32_75 : i32 to vector<1x128xi32>
    %154 = arith.addi %152, %153 : vector<1x128xi32>
    %c16_i32_76 = arith.constant 16 : i32
    %155 = vector.broadcast %c16_i32_76 : i32 to vector<1x128xi32>
    %156 = arith.minsi %154, %155 : vector<1x128xi32>
    %157 = arith.sitofp %156 : vector<1x128xi32> to vector<1x128xf32>
    %c6 = arith.constant 6 : index
    %c0_77 = arith.constant 0 : index
    %158 = vector.load %arg4[%c6, %c0_77] : memref<16x128xf32, #tpu.memory_space<vmem>>, vector<1x128xf32>
    tpu.vector_store %arg4[%c6, %c0_77], %157 {strides = array<i32>} : memref<16x128xf32, #tpu.memory_space<vmem>>, vector<1x128xf32>,
    %cst_78 = arith.constant 7.000000e+00 : f32
    %159 = arith.addf %1, %cst_78 : f32
    %160 = vector.broadcast %159 : f32 to vector<32x128xf32>
    %161 = arith.subf %160, %2 : vector<32x128xf32>
    %cst_79 = arith.constant 0.000000e+00 : f32
    %162 = vector.broadcast %cst_79 : f32 to vector<32x128xf32>
    %163 = arith.maximumf %161, %162 : vector<32x128xf32>
    %cst_80 = arith.constant dense<0.000000e+00> : vector<16x128xf32>
    %164 = tpu.matmul %3, %163, %cst_80 {dimension_numbers = #tpu.dot_dimension_numbers<[1], [0], [0], [1], [0, 0, 1, 1], [], []>} : vector<16x32xf32>, vector<32x128xf32>, vector<16x128xf32> -> vector<16x128xf32>
    %cst_81 = arith.constant 1.000000e+00 : f32
    %165 = vector.broadcast %cst_81 : f32 to vector<16x128xf32>
    %166 = arith.cmpf ogt, %164, %165 : vector<16x128xf32>
    %c16_i32_82 = arith.constant 16 : i32
    %167 = vector.broadcast %c16_i32_82 : i32 to vector<16x128xi32>
    %168 = arith.select %166, %4, %167 : vector<16x128xi1>, vector<16x128xi32>
    %cst_83 = arith.constant dense<2147483647> : vector<128xi32>
    %169 = vector.multi_reduction <minsi>, %168, %cst_83 [0] : vector<16x128xi32> to vector<128xi32>
    %170 = vector.shape_cast %169 : vector<128xi32> to vector<1x128xi32>
    %c16_i32_84 = arith.constant 16 : i32
    %171 = vector.broadcast %c16_i32_84 : i32 to vector<1x128xi32>
    %172 = arith.cmpi eq, %170, %171 : vector<1x128xi32>
    %c0_i32_85 = arith.constant 0 : i32
    %173 = vector.broadcast %c0_i32_85 : i32 to vector<1x128xi32>
    %174 = arith.select %172, %173, %170 : vector<1x128xi1>, vector<1x128xi32>
    %c1_i32_86 = arith.constant 1 : i32
    %175 = vector.broadcast %c1_i32_86 : i32 to vector<1x128xi32>
    %176 = arith.addi %174, %175 : vector<1x128xi32>
    %c16_i32_87 = arith.constant 16 : i32
    %177 = vector.broadcast %c16_i32_87 : i32 to vector<1x128xi32>
    %178 = arith.minsi %176, %177 : vector<1x128xi32>
    %179 = arith.sitofp %178 : vector<1x128xi32> to vector<1x128xf32>
    %c7 = arith.constant 7 : index
    %c0_88 = arith.constant 0 : index
    %180 = vector.load %arg4[%c7, %c0_88] : memref<16x128xf32, #tpu.memory_space<vmem>>, vector<1x128xf32>
    tpu.vector_store %arg4[%c7, %c0_88], %179 {strides = array<i32>} : memref<16x128xf32, #tpu.memory_space<vmem>>, vector<1x128xf32>,
    %cst_89 = arith.constant 8.000000e+00 : f32
    %181 = arith.addf %1, %cst_89 : f32
    %182 = vector.broadcast %181 : f32 to vector<32x128xf32>
    %183 = arith.subf %182, %2 : vector<32x128xf32>
    %cst_90 = arith.constant 0.000000e+00 : f32
    %184 = vector.broadcast %cst_90 : f32 to vector<32x128xf32>
    %185 = arith.maximumf %183, %184 : vector<32x128xf32>
    %cst_91 = arith.constant dense<0.000000e+00> : vector<16x128xf32>
    %186 = tpu.matmul %3, %185, %cst_91 {dimension_numbers = #tpu.dot_dimension_numbers<[1], [0], [0], [1], [0, 0, 1, 1], [], []>} : vector<16x32xf32>, vector<32x128xf32>, vector<16x128xf32> -> vector<16x128xf32>
    %cst_92 = arith.constant 1.000000e+00 : f32
    %187 = vector.broadcast %cst_92 : f32 to vector<16x128xf32>
    %188 = arith.cmpf ogt, %186, %187 : vector<16x128xf32>
    %c16_i32_93 = arith.constant 16 : i32
    %189 = vector.broadcast %c16_i32_93 : i32 to vector<16x128xi32>
    %190 = arith.select %188, %4, %189 : vector<16x128xi1>, vector<16x128xi32>
    %cst_94 = arith.constant dense<2147483647> : vector<128xi32>
    %191 = vector.multi_reduction <minsi>, %190, %cst_94 [0] : vector<16x128xi32> to vector<128xi32>
    %192 = vector.shape_cast %191 : vector<128xi32> to vector<1x128xi32>
    %c16_i32_95 = arith.constant 16 : i32
    %193 = vector.broadcast %c16_i32_95 : i32 to vector<1x128xi32>
    %194 = arith.cmpi eq, %192, %193 : vector<1x128xi32>
    %c0_i32_96 = arith.constant 0 : i32
    %195 = vector.broadcast %c0_i32_96 : i32 to vector<1x128xi32>
    %196 = arith.select %194, %195, %192 : vector<1x128xi1>, vector<1x128xi32>
    %c1_i32_97 = arith.constant 1 : i32
    %197 = vector.broadcast %c1_i32_97 : i32 to vector<1x128xi32>
    %198 = arith.addi %196, %197 : vector<1x128xi32>
    %c16_i32_98 = arith.constant 16 : i32
    %199 = vector.broadcast %c16_i32_98 : i32 to vector<1x128xi32>
    %200 = arith.minsi %198, %199 : vector<1x128xi32>
    %201 = arith.sitofp %200 : vector<1x128xi32> to vector<1x128xf32>
    %c8 = arith.constant 8 : index
    %c0_99 = arith.constant 0 : index
    %202 = vector.load %arg4[%c8, %c0_99] : memref<16x128xf32, #tpu.memory_space<vmem>>, vector<1x128xf32>
    tpu.vector_store %arg4[%c8, %c0_99], %201 {strides = array<i32>} : memref<16x128xf32, #tpu.memory_space<vmem>>, vector<1x128xf32>,
    %cst_100 = arith.constant 9.000000e+00 : f32
    %203 = arith.addf %1, %cst_100 : f32
    %204 = vector.broadcast %203 : f32 to vector<32x128xf32>
    %205 = arith.subf %204, %2 : vector<32x128xf32>
    %cst_101 = arith.constant 0.000000e+00 : f32
    %206 = vector.broadcast %cst_101 : f32 to vector<32x128xf32>
    %207 = arith.maximumf %205, %206 : vector<32x128xf32>
    %cst_102 = arith.constant dense<0.000000e+00> : vector<16x128xf32>
    %208 = tpu.matmul %3, %207, %cst_102 {dimension_numbers = #tpu.dot_dimension_numbers<[1], [0], [0], [1], [0, 0, 1, 1], [], []>} : vector<16x32xf32>, vector<32x128xf32>, vector<16x128xf32> -> vector<16x128xf32>
    %cst_103 = arith.constant 1.000000e+00 : f32
    %209 = vector.broadcast %cst_103 : f32 to vector<16x128xf32>
    %210 = arith.cmpf ogt, %208, %209 : vector<16x128xf32>
    %c16_i32_104 = arith.constant 16 : i32
    %211 = vector.broadcast %c16_i32_104 : i32 to vector<16x128xi32>
    %212 = arith.select %210, %4, %211 : vector<16x128xi1>, vector<16x128xi32>
    %cst_105 = arith.constant dense<2147483647> : vector<128xi32>
    %213 = vector.multi_reduction <minsi>, %212, %cst_105 [0] : vector<16x128xi32> to vector<128xi32>
    %214 = vector.shape_cast %213 : vector<128xi32> to vector<1x128xi32>
    %c16_i32_106 = arith.constant 16 : i32
    %215 = vector.broadcast %c16_i32_106 : i32 to vector<1x128xi32>
    %216 = arith.cmpi eq, %214, %215 : vector<1x128xi32>
    %c0_i32_107 = arith.constant 0 : i32
    %217 = vector.broadcast %c0_i32_107 : i32 to vector<1x128xi32>
    %218 = arith.select %216, %217, %214 : vector<1x128xi1>, vector<1x128xi32>
    %c1_i32_108 = arith.constant 1 : i32
    %219 = vector.broadcast %c1_i32_108 : i32 to vector<1x128xi32>
    %220 = arith.addi %218, %219 : vector<1x128xi32>
    %c16_i32_109 = arith.constant 16 : i32
    %221 = vector.broadcast %c16_i32_109 : i32 to vector<1x128xi32>
    %222 = arith.minsi %220, %221 : vector<1x128xi32>
    %223 = arith.sitofp %222 : vector<1x128xi32> to vector<1x128xf32>
    %c9 = arith.constant 9 : index
    %c0_110 = arith.constant 0 : index
    %224 = vector.load %arg4[%c9, %c0_110] : memref<16x128xf32, #tpu.memory_space<vmem>>, vector<1x128xf32>
    tpu.vector_store %arg4[%c9, %c0_110], %223 {strides = array<i32>} : memref<16x128xf32, #tpu.memory_space<vmem>>, vector<1x128xf32>,
    %cst_111 = arith.constant 1.000000e+01 : f32
    %225 = arith.addf %1, %cst_111 : f32
    %226 = vector.broadcast %225 : f32 to vector<32x128xf32>
    %227 = arith.subf %226, %2 : vector<32x128xf32>
    %cst_112 = arith.constant 0.000000e+00 : f32
    %228 = vector.broadcast %cst_112 : f32 to vector<32x128xf32>
    %229 = arith.maximumf %227, %228 : vector<32x128xf32>
    %cst_113 = arith.constant dense<0.000000e+00> : vector<16x128xf32>
    %230 = tpu.matmul %3, %229, %cst_113 {dimension_numbers = #tpu.dot_dimension_numbers<[1], [0], [0], [1], [0, 0, 1, 1], [], []>} : vector<16x32xf32>, vector<32x128xf32>, vector<16x128xf32> -> vector<16x128xf32>
    %cst_114 = arith.constant 1.000000e+00 : f32
    %231 = vector.broadcast %cst_114 : f32 to vector<16x128xf32>
    %232 = arith.cmpf ogt, %230, %231 : vector<16x128xf32>
    %c16_i32_115 = arith.constant 16 : i32
    %233 = vector.broadcast %c16_i32_115 : i32 to vector<16x128xi32>
    %234 = arith.select %232, %4, %233 : vector<16x128xi1>, vector<16x128xi32>
    %cst_116 = arith.constant dense<2147483647> : vector<128xi32>
    %235 = vector.multi_reduction <minsi>, %234, %cst_116 [0] : vector<16x128xi32> to vector<128xi32>
    %236 = vector.shape_cast %235 : vector<128xi32> to vector<1x128xi32>
    %c16_i32_117 = arith.constant 16 : i32
    %237 = vector.broadcast %c16_i32_117 : i32 to vector<1x128xi32>
    %238 = arith.cmpi eq, %236, %237 : vector<1x128xi32>
    %c0_i32_118 = arith.constant 0 : i32
    %239 = vector.broadcast %c0_i32_118 : i32 to vector<1x128xi32>
    %240 = arith.select %238, %239, %236 : vector<1x128xi1>, vector<1x128xi32>
    %c1_i32_119 = arith.constant 1 : i32
    %241 = vector.broadcast %c1_i32_119 : i32 to vector<1x128xi32>
    %242 = arith.addi %240, %241 : vector<1x128xi32>
    %c16_i32_120 = arith.constant 16 : i32
    %243 = vector.broadcast %c16_i32_120 : i32 to vector<1x128xi32>
    %244 = arith.minsi %242, %243 : vector<1x128xi32>
    %245 = arith.sitofp %244 : vector<1x128xi32> to vector<1x128xf32>
    %c10 = arith.constant 10 : index
    %c0_121 = arith.constant 0 : index
    %246 = vector.load %arg4[%c10, %c0_121] : memref<16x128xf32, #tpu.memory_space<vmem>>, vector<1x128xf32>
    tpu.vector_store %arg4[%c10, %c0_121], %245 {strides = array<i32>} : memref<16x128xf32, #tpu.memory_space<vmem>>, vector<1x128xf32>,
    %cst_122 = arith.constant 1.100000e+01 : f32
    %247 = arith.addf %1, %cst_122 : f32
    %248 = vector.broadcast %247 : f32 to vector<32x128xf32>
    %249 = arith.subf %248, %2 : vector<32x128xf32>
    %cst_123 = arith.constant 0.000000e+00 : f32
    %250 = vector.broadcast %cst_123 : f32 to vector<32x128xf32>
    %251 = arith.maximumf %249, %250 : vector<32x128xf32>
    %cst_124 = arith.constant dense<0.000000e+00> : vector<16x128xf32>
    %252 = tpu.matmul %3, %251, %cst_124 {dimension_numbers = #tpu.dot_dimension_numbers<[1], [0], [0], [1], [0, 0, 1, 1], [], []>} : vector<16x32xf32>, vector<32x128xf32>, vector<16x128xf32> -> vector<16x128xf32>
    %cst_125 = arith.constant 1.000000e+00 : f32
    %253 = vector.broadcast %cst_125 : f32 to vector<16x128xf32>
    %254 = arith.cmpf ogt, %252, %253 : vector<16x128xf32>
    %c16_i32_126 = arith.constant 16 : i32
    %255 = vector.broadcast %c16_i32_126 : i32 to vector<16x128xi32>
    %256 = arith.select %254, %4, %255 : vector<16x128xi1>, vector<16x128xi32>
    %cst_127 = arith.constant dense<2147483647> : vector<128xi32>
    %257 = vector.multi_reduction <minsi>, %256, %cst_127 [0] : vector<16x128xi32> to vector<128xi32>
    %258 = vector.shape_cast %257 : vector<128xi32> to vector<1x128xi32>
    %c16_i32_128 = arith.constant 16 : i32
    %259 = vector.broadcast %c16_i32_128 : i32 to vector<1x128xi32>
    %260 = arith.cmpi eq, %258, %259 : vector<1x128xi32>
    %c0_i32_129 = arith.constant 0 : i32
    %261 = vector.broadcast %c0_i32_129 : i32 to vector<1x128xi32>
    %262 = arith.select %260, %261, %258 : vector<1x128xi1>, vector<1x128xi32>
    %c1_i32_130 = arith.constant 1 : i32
    %263 = vector.broadcast %c1_i32_130 : i32 to vector<1x128xi32>
    %264 = arith.addi %262, %263 : vector<1x128xi32>
    %c16_i32_131 = arith.constant 16 : i32
    %265 = vector.broadcast %c16_i32_131 : i32 to vector<1x128xi32>
    %266 = arith.minsi %264, %265 : vector<1x128xi32>
    %267 = arith.sitofp %266 : vector<1x128xi32> to vector<1x128xf32>
    %c11 = arith.constant 11 : index
    %c0_132 = arith.constant 0 : index
    %268 = vector.load %arg4[%c11, %c0_132] : memref<16x128xf32, #tpu.memory_space<vmem>>, vector<1x128xf32>
    tpu.vector_store %arg4[%c11, %c0_132], %267 {strides = array<i32>} : memref<16x128xf32, #tpu.memory_space<vmem>>, vector<1x128xf32>,
    %cst_133 = arith.constant 1.200000e+01 : f32
    %269 = arith.addf %1, %cst_133 : f32
    %270 = vector.broadcast %269 : f32 to vector<32x128xf32>
    %271 = arith.subf %270, %2 : vector<32x128xf32>
    %cst_134 = arith.constant 0.000000e+00 : f32
    %272 = vector.broadcast %cst_134 : f32 to vector<32x128xf32>
    %273 = arith.maximumf %271, %272 : vector<32x128xf32>
    %cst_135 = arith.constant dense<0.000000e+00> : vector<16x128xf32>
    %274 = tpu.matmul %3, %273, %cst_135 {dimension_numbers = #tpu.dot_dimension_numbers<[1], [0], [0], [1], [0, 0, 1, 1], [], []>} : vector<16x32xf32>, vector<32x128xf32>, vector<16x128xf32> -> vector<16x128xf32>
    %cst_136 = arith.constant 1.000000e+00 : f32
    %275 = vector.broadcast %cst_136 : f32 to vector<16x128xf32>
    %276 = arith.cmpf ogt, %274, %275 : vector<16x128xf32>
    %c16_i32_137 = arith.constant 16 : i32
    %277 = vector.broadcast %c16_i32_137 : i32 to vector<16x128xi32>
    %278 = arith.select %276, %4, %277 : vector<16x128xi1>, vector<16x128xi32>
    %cst_138 = arith.constant dense<2147483647> : vector<128xi32>
    %279 = vector.multi_reduction <minsi>, %278, %cst_138 [0] : vector<16x128xi32> to vector<128xi32>
    %280 = vector.shape_cast %279 : vector<128xi32> to vector<1x128xi32>
    %c16_i32_139 = arith.constant 16 : i32
    %281 = vector.broadcast %c16_i32_139 : i32 to vector<1x128xi32>
    %282 = arith.cmpi eq, %280, %281 : vector<1x128xi32>
    %c0_i32_140 = arith.constant 0 : i32
    %283 = vector.broadcast %c0_i32_140 : i32 to vector<1x128xi32>
    %284 = arith.select %282, %283, %280 : vector<1x128xi1>, vector<1x128xi32>
    %c1_i32_141 = arith.constant 1 : i32
    %285 = vector.broadcast %c1_i32_141 : i32 to vector<1x128xi32>
    %286 = arith.addi %284, %285 : vector<1x128xi32>
    %c16_i32_142 = arith.constant 16 : i32
    %287 = vector.broadcast %c16_i32_142 : i32 to vector<1x128xi32>
    %288 = arith.minsi %286, %287 : vector<1x128xi32>
    %289 = arith.sitofp %288 : vector<1x128xi32> to vector<1x128xf32>
    %c12 = arith.constant 12 : index
    %c0_143 = arith.constant 0 : index
    %290 = vector.load %arg4[%c12, %c0_143] : memref<16x128xf32, #tpu.memory_space<vmem>>, vector<1x128xf32>
    tpu.vector_store %arg4[%c12, %c0_143], %289 {strides = array<i32>} : memref<16x128xf32, #tpu.memory_space<vmem>>, vector<1x128xf32>,
    %cst_144 = arith.constant 1.300000e+01 : f32
    %291 = arith.addf %1, %cst_144 : f32
    %292 = vector.broadcast %291 : f32 to vector<32x128xf32>
    %293 = arith.subf %292, %2 : vector<32x128xf32>
    %cst_145 = arith.constant 0.000000e+00 : f32
    %294 = vector.broadcast %cst_145 : f32 to vector<32x128xf32>
    %295 = arith.maximumf %293, %294 : vector<32x128xf32>
    %cst_146 = arith.constant dense<0.000000e+00> : vector<16x128xf32>
    %296 = tpu.matmul %3, %295, %cst_146 {dimension_numbers = #tpu.dot_dimension_numbers<[1], [0], [0], [1], [0, 0, 1, 1], [], []>} : vector<16x32xf32>, vector<32x128xf32>, vector<16x128xf32> -> vector<16x128xf32>
    %cst_147 = arith.constant 1.000000e+00 : f32
    %297 = vector.broadcast %cst_147 : f32 to vector<16x128xf32>
    %298 = arith.cmpf ogt, %296, %297 : vector<16x128xf32>
    %c16_i32_148 = arith.constant 16 : i32
    %299 = vector.broadcast %c16_i32_148 : i32 to vector<16x128xi32>
    %300 = arith.select %298, %4, %299 : vector<16x128xi1>, vector<16x128xi32>
    %cst_149 = arith.constant dense<2147483647> : vector<128xi32>
    %301 = vector.multi_reduction <minsi>, %300, %cst_149 [0] : vector<16x128xi32> to vector<128xi32>
    %302 = vector.shape_cast %301 : vector<128xi32> to vector<1x128xi32>
    %c16_i32_150 = arith.constant 16 : i32
    %303 = vector.broadcast %c16_i32_150 : i32 to vector<1x128xi32>
    %304 = arith.cmpi eq, %302, %303 : vector<1x128xi32>
    %c0_i32_151 = arith.constant 0 : i32
    %305 = vector.broadcast %c0_i32_151 : i32 to vector<1x128xi32>
    %306 = arith.select %304, %305, %302 : vector<1x128xi1>, vector<1x128xi32>
    %c1_i32_152 = arith.constant 1 : i32
    %307 = vector.broadcast %c1_i32_152 : i32 to vector<1x128xi32>
    %308 = arith.addi %306, %307 : vector<1x128xi32>
    %c16_i32_153 = arith.constant 16 : i32
    %309 = vector.broadcast %c16_i32_153 : i32 to vector<1x128xi32>
    %310 = arith.minsi %308, %309 : vector<1x128xi32>
    %311 = arith.sitofp %310 : vector<1x128xi32> to vector<1x128xf32>
    %c13 = arith.constant 13 : index
    %c0_154 = arith.constant 0 : index
    %312 = vector.load %arg4[%c13, %c0_154] : memref<16x128xf32, #tpu.memory_space<vmem>>, vector<1x128xf32>
    tpu.vector_store %arg4[%c13, %c0_154], %311 {strides = array<i32>} : memref<16x128xf32, #tpu.memory_space<vmem>>, vector<1x128xf32>,
    %cst_155 = arith.constant 1.400000e+01 : f32
    %313 = arith.addf %1, %cst_155 : f32
    %314 = vector.broadcast %313 : f32 to vector<32x128xf32>
    %315 = arith.subf %314, %2 : vector<32x128xf32>
    %cst_156 = arith.constant 0.000000e+00 : f32
    %316 = vector.broadcast %cst_156 : f32 to vector<32x128xf32>
    %317 = arith.maximumf %315, %316 : vector<32x128xf32>
    %cst_157 = arith.constant dense<0.000000e+00> : vector<16x128xf32>
    %318 = tpu.matmul %3, %317, %cst_157 {dimension_numbers = #tpu.dot_dimension_numbers<[1], [0], [0], [1], [0, 0, 1, 1], [], []>} : vector<16x32xf32>, vector<32x128xf32>, vector<16x128xf32> -> vector<16x128xf32>
    %cst_158 = arith.constant 1.000000e+00 : f32
    %319 = vector.broadcast %cst_158 : f32 to vector<16x128xf32>
    %320 = arith.cmpf ogt, %318, %319 : vector<16x128xf32>
    %c16_i32_159 = arith.constant 16 : i32
    %321 = vector.broadcast %c16_i32_159 : i32 to vector<16x128xi32>
    %322 = arith.select %320, %4, %321 : vector<16x128xi1>, vector<16x128xi32>
    %cst_160 = arith.constant dense<2147483647> : vector<128xi32>
    %323 = vector.multi_reduction <minsi>, %322, %cst_160 [0] : vector<16x128xi32> to vector<128xi32>
    %324 = vector.shape_cast %323 : vector<128xi32> to vector<1x128xi32>
    %c16_i32_161 = arith.constant 16 : i32
    %325 = vector.broadcast %c16_i32_161 : i32 to vector<1x128xi32>
    %326 = arith.cmpi eq, %324, %325 : vector<1x128xi32>
    %c0_i32_162 = arith.constant 0 : i32
    %327 = vector.broadcast %c0_i32_162 : i32 to vector<1x128xi32>
    %328 = arith.select %326, %327, %324 : vector<1x128xi1>, vector<1x128xi32>
    %c1_i32_163 = arith.constant 1 : i32
    %329 = vector.broadcast %c1_i32_163 : i32 to vector<1x128xi32>
    %330 = arith.addi %328, %329 : vector<1x128xi32>
    %c16_i32_164 = arith.constant 16 : i32
    %331 = vector.broadcast %c16_i32_164 : i32 to vector<1x128xi32>
    %332 = arith.minsi %330, %331 : vector<1x128xi32>
    %333 = arith.sitofp %332 : vector<1x128xi32> to vector<1x128xf32>
    %c14 = arith.constant 14 : index
    %c0_165 = arith.constant 0 : index
    %334 = vector.load %arg4[%c14, %c0_165] : memref<16x128xf32, #tpu.memory_space<vmem>>, vector<1x128xf32>
    tpu.vector_store %arg4[%c14, %c0_165], %333 {strides = array<i32>} : memref<16x128xf32, #tpu.memory_space<vmem>>, vector<1x128xf32>,
    %cst_166 = arith.constant 1.500000e+01 : f32
    %335 = arith.addf %1, %cst_166 : f32
    %336 = vector.broadcast %335 : f32 to vector<32x128xf32>
    %337 = arith.subf %336, %2 : vector<32x128xf32>
    %cst_167 = arith.constant 0.000000e+00 : f32
    %338 = vector.broadcast %cst_167 : f32 to vector<32x128xf32>
    %339 = arith.maximumf %337, %338 : vector<32x128xf32>
    %cst_168 = arith.constant dense<0.000000e+00> : vector<16x128xf32>
    %340 = tpu.matmul %3, %339, %cst_168 {dimension_numbers = #tpu.dot_dimension_numbers<[1], [0], [0], [1], [0, 0, 1, 1], [], []>} : vector<16x32xf32>, vector<32x128xf32>, vector<16x128xf32> -> vector<16x128xf32>
    %cst_169 = arith.constant 1.000000e+00 : f32
    %341 = vector.broadcast %cst_169 : f32 to vector<16x128xf32>
    %342 = arith.cmpf ogt, %340, %341 : vector<16x128xf32>
    %c16_i32_170 = arith.constant 16 : i32
    %343 = vector.broadcast %c16_i32_170 : i32 to vector<16x128xi32>
    %344 = arith.select %342, %4, %343 : vector<16x128xi1>, vector<16x128xi32>
    %cst_171 = arith.constant dense<2147483647> : vector<128xi32>
    %345 = vector.multi_reduction <minsi>, %344, %cst_171 [0] : vector<16x128xi32> to vector<128xi32>
    %346 = vector.shape_cast %345 : vector<128xi32> to vector<1x128xi32>
    %c16_i32_172 = arith.constant 16 : i32
    %347 = vector.broadcast %c16_i32_172 : i32 to vector<1x128xi32>
    %348 = arith.cmpi eq, %346, %347 : vector<1x128xi32>
    %c0_i32_173 = arith.constant 0 : i32
    %349 = vector.broadcast %c0_i32_173 : i32 to vector<1x128xi32>
    %350 = arith.select %348, %349, %346 : vector<1x128xi1>, vector<1x128xi32>
    %c1_i32_174 = arith.constant 1 : i32
    %351 = vector.broadcast %c1_i32_174 : i32 to vector<1x128xi32>
    %352 = arith.addi %350, %351 : vector<1x128xi32>
    %c16_i32_175 = arith.constant 16 : i32
    %353 = vector.broadcast %c16_i32_175 : i32 to vector<1x128xi32>
    %354 = arith.minsi %352, %353 : vector<1x128xi32>
    %355 = arith.sitofp %354 : vector<1x128xi32> to vector<1x128xf32>
    %c15 = arith.constant 15 : index
    %c0_176 = arith.constant 0 : index
    %356 = vector.load %arg4[%c15, %c0_176] : memref<16x128xf32, #tpu.memory_space<vmem>>, vector<1x128xf32>
    tpu.vector_store %arg4[%c15, %c0_176], %355 {strides = array<i32>} : memref<16x128xf32, #tpu.memory_space<vmem>>, vector<1x128xf32>,
    return
  }
  func.func @transform_0(%arg0: i32, %arg1: i32) -> (i32, i32) {
    %c0_i32 = arith.constant 0 : i32
    %c0_i32_0 = arith.constant 0 : i32
    return %c0_i32, %arg0 : i32, i32
  }
  func.func @transform_1(%arg0: i32, %arg1: i32) -> (i32, i32) {
    %c0_i32 = arith.constant 0 : i32
    %c0_i32_0 = arith.constant 0 : i32
    %c0_i32_1 = arith.constant 0 : i32
    return %c0_i32, %c0_i32_0 : i32, i32
  }
  func.func @transform_2(%arg0: i32, %arg1: i32) -> (i32, i32) {
    %c0_i32 = arith.constant 0 : i32
    return %arg1, %arg0 : i32, i32
  }
}

</mosaic_0001>

<bundles_post_ra>
// kernel: tpu_custom_call.1
= control target key start
LH: loop header
LB: loop body
LE: loop exit
PB: predicated region body
PF: predicated region fallthrough
CT: control target
= control target key end

     0   :  { %7 = vsyncpa [#allocation3], 0  ;;  %s2563_s0 = inlined_call_operand.hbm [shape: f32[32,128], index: 0, kind: input, shape index: {}]   ;;  %s2564_s1 = inlined_call_operand.hbm [shape: f32[16,32], index: 1, kind: input, shape index: {}]   ;;  %s2565_s2 = inlined_call_operand.hbm [shape: f32[16,128], index: 2, kind: output, shape index: {}]  }
   0x1   :  { %8 = vsyncpa [#allocation6], 0 }
   0x2   :  { %9 = vsyncpa [#allocation4], 0  ;;  %s2297_s9 = smov [#allocation2]   ;;  %s2225_s13 = scalar_lea.hbm %s2563_s0, 512 }
   0x3   :  { %s15_s10 = sshll.u32 %s2297_s9, 4  ;;  %p2226_p0 = scmp.ne.s32.totalorder %s2563_s0, %s2225_s13  ;;  %s16_s10 = int_to_ptr.vmem [resolvable:$true] %s15_s10 }
   0x4   :  { %p2229_p1 = scmp.lt.u32.totalorder %s2225_s13, %s2563_s0 }
   0x6   :  { %p2231_p2 = pnand %p2229_p1, %p2226_p0 }
   0x8   :  { %2234 = shalt.err (!%p2231_p2)
}
   0x9   :  { %s2235_s18 = scalar_lea.vmem %s16_s10, 512  ;;  %p2240_p4 = scmp.lt.s32.totalorder %s16_s10, %s16_s10 }
   0xa   :  { %p2236_p3 = scmp.ne.s32.totalorder %s16_s10, %s2235_s18  ;;  %p2241_p5 = scmp.lt.s32.totalorder %s2235_s18, %s2235_s18 }
   0xc   :  { %p2242_p6 = por %p2241_p5, %p2240_p4 }
   0xe   :  { %p2243_p7 = pnand %p2242_p6, %p2236_p3 }
  0x10   :  { %2246 = shalt.err (!%p2243_p7)
}
  0x11   :  { %s2298_s19 = smov 128   ;;  %s2299_s20 = smov 8  }
  0x12   :  { %21 = dma.hbm_to_vmem [thread:$0]  %s2563_s0, 512, %s16_s10, [#allocation3], %s2298_s19, %s2298_s19, %s2299_s20  }
  0x13   :  { %s2300_s23 = smov [#allocation5]   ;;  %s2247_s27 = scalar_lea.hbm %s2564_s1, 256 }
  0x14   :  { %s27_s24 = sshll.u32 %s2300_s23, 4  ;;  %p2248_p8 = scmp.ne.s32.totalorder %s2564_s1, %s2247_s27  ;;  %s28_s24 = int_to_ptr.vmem [resolvable:$true] %s27_s24 }
  0x15   :  { %p2251_p9 = scmp.lt.u32.totalorder %s2247_s27, %s2564_s1 }
  0x17   :  { %p2253_p10 = pnand %p2251_p9, %p2248_p8 }
  0x19   :  { %2256 = shalt.err (!%p2253_p10)
}
  0x1a   :  { %s2257_s4 = scalar_lea.vmem %s28_s24, 256  ;;  %p2262_p12 = scmp.lt.s32.totalorder %s28_s24, %s28_s24 }
  0x1b   :  { %p2258_p11 = scmp.ne.s32.totalorder %s28_s24, %s2257_s4  ;;  %p2263_p13 = scmp.lt.s32.totalorder %s2257_s4, %s2257_s4 }
  0x1d   :  { %p2264_p0 = por %p2263_p13, %p2262_p12 }
  0x1f   :  { %p2265_p1 = pnand %p2264_p0, %p2258_p11 }
  0x21   :  { %2268 = shalt.err (!%p2265_p1)
}
  0x22   :  { %33 = dma.hbm_to_vmem [thread:$0]  %s2564_s1, 256, %s28_s24, [#allocation6], %s2298_s19, %s2298_s19, %s2299_s20  }
  0x23   :  { %2291 = dma.done.wait [#allocation3], 512  }
  0x24   :  { %2292 = vsyncadd [#allocation3], 4294966784 }
  0x25   :  { %2293 = dma.done.wait [#allocation6], 256  }
  0x26   :  { %2294 = vsyncadd [#allocation6], 4294967040  ;;  %vm61_vm0 = vcmask 261120   ;;  %v2347_v0 = vld [vmem:[#allocation2] sm:$0xff]  ;;  %v2349_v1 = vld [vmem:[#allocation2 + $0x8] sm:$0xff]  ;;  %s2301_s1 = smov [#allocation7]  }
  0x27   :  { %v2351_v2 = vld [vmem:[#allocation2 + $0x10] sm:$0xff]  ;;  %v53_v3 = vsub.f32 0.0, %v2347_v0  ;;  %v54_v4 = vsub.f32 0.0, %v2349_v1  ;;  %v167_v5 = vsub.f32 1.0, %v2347_v0  ;;  %v168_v6 = vsub.f32 1.0, %v2349_v1  ;;  %v2357_v7 = vld [vmem:[#allocation2 + $0x18] sm:$0xff] }
  0x28   :  { %v2359_v8 = vld [vmem:[#allocation5] sm:$0xff]  ;;  %v55_v9 = vsub.f32 0.0, %v2351_v2  ;;  %v56_v10 = vsub.f32 0.0, %v2357_v7  ;;  %v169_v11 = vsub.f32 1.0, %v2351_v2  ;;  %v170_v12 = vsub.f32 1.0, %v2357_v7  ;;  %v2381_v49 = vld [vmem:[#allocation5 + $0x8] sm:$0xff] }
  0x29   :  { %1924 = vmatprep.mubr.msk.f32.mxu0 %vm61_vm0, %v2359_v8  ;;  %1935 = vmatprep.mubr.msk.f32.mxu1 %vm61_vm0, %v2359_v8  ;;  %v57_v13 = vmax.f32 %v53_v3, 0.0  ;;  %v58_v14 = vmax.f32 %v54_v4, 0.0  ;;  %v171_v15 = vmax.f32 %v167_v5, 0.0  ;;  %v172_v16 = vmax.f32 %v168_v6, 0.0  ;;  %s1775_s6 = sshll.u32 %s2301_s1, 4  ;;  %s1776_s6 = int_to_ptr.vmem [resolvable:$true] %s1775_s6 }
  0x2a   :  { %v59_v17 = vmax.f32 %v55_v9, 0.0  ;;  %v60_v18 = vmax.f32 %v56_v10, 0.0  ;;  %v173_v19 = vmax.f32 %v169_v11, 0.0  ;;  %v174_v20 = vmax.f32 %v170_v12, 0.0  ;;  %s2269_s7 = scalar_lea.vmem %s1776_s6, 256  ;;  %p2274_p3 = scmp.lt.s32.totalorder %s1776_s6, %s1776_s6 }
  0x2b   :  { %v2092_v21 = vpack.c.bf16 %v58_v14, %v57_v13  ;;  %v2100_v22 = vpack.c.bf16 %v172_v16, %v171_v15  ;;  %v274_v23 = vsub.f32 2.0, %v2347_v0  ;;  %v275_v24 = vsub.f32 2.0, %v2349_v1  ;;  %p2270_p2 = scmp.ne.s32.totalorder %s1776_s6, %s2269_s7  ;;  %p2275_p4 = scmp.lt.s32.totalorder %s2269_s7, %s2269_s7 }
  0x2c   :  { %v2096_v25 = vpack.c.bf16 %v60_v18, %v59_v17  ;;  %v2104_v26 = vpack.c.bf16 %v174_v20, %v173_v19  ;;  %v381_v27 = vsub.f32 3.0, %v2347_v0  ;;  %v382_v28 = vsub.f32 3.0, %v2349_v1 }
  0x2d   :  { %2093 = vmatprep.subr.bf16.mxu0 %v2092_v21  ;;  %2101 = vmatprep.subr.bf16.mxu1 %v2100_v22  ;;  %v278_v29 = vmax.f32 %v274_v23, 0.0  ;;  %v279_v30 = vmax.f32 %v275_v24, 0.0  ;;  %v276_v31 = vsub.f32 2.0, %v2351_v2  ;;  %v277_v32 = vsub.f32 2.0, %v2357_v7  ;;  %p2276_p5 = por %p2275_p4, %p2274_p3 }
  0x2e   :  { %2095 = vmatpush3.bf16.msra.mxu0 %v2092_v21  ;;  %2103 = vmatpush3.bf16.msra.mxu1 %v2100_v22  ;;  %v385_v33 = vmax.f32 %v381_v27, 0.0  ;;  %v386_v34 = vmax.f32 %v382_v28, 0.0  ;;  %v383_v35 = vsub.f32 3.0, %v2351_v2  ;;  %v384_v36 = vsub.f32 3.0, %v2357_v7 }
  0x2f   :  { %2097 = vmatprep.subr.bf16.mxu0 %v2096_v25  ;;  %2105 = vmatprep.subr.bf16.mxu1 %v2104_v26  ;;  %v2108_v37 = vpack.c.bf16 %v279_v30, %v278_v29  ;;  %v280_v38 = vmax.f32 %v276_v31, 0.0  ;;  %v281_v39 = vmax.f32 %v277_v32, 0.0  ;;  %v488_v40 = vsub.f32 4.0, %v2347_v0  ;;  %p2277_p6 = pnand %p2276_p5, %p2270_p2 }
  0x30   :  { %v2116_v41 = vpack.c.bf16 %v386_v34, %v385_v33  ;;  %v387_v42 = vmax.f32 %v383_v35, 0.0  ;;  %v388_v43 = vmax.f32 %v384_v36, 0.0  ;;  %v489_v44 = vsub.f32 4.0, %v2349_v1 }
  0x31   :  { %v2112_v45 = vpack.c.bf16 %v281_v39, %v280_v38  ;;  %v492_v46 = vmax.f32 %v488_v40, 0.0  ;;  %v595_v47 = vsub.f32 5.0, %v2347_v0  ;;  %v596_v48 = vsub.f32 5.0, %v2349_v1 }
  0x32   :  { %2099 = vmatpush3.bf16.msra.mxu0 %v2096_v25  ;;  %2107 = vmatpush3.bf16.msra.mxu1 %v2104_v26  ;;  %v2120_v50 = vpack.c.bf16 %v388_v43, %v387_v42  ;;  %v493_v51 = vmax.f32 %v489_v44, 0.0  ;;  %v490_v52 = vsub.f32 4.0, %v2351_v2  ;;  %v491_v53 = vsub.f32 4.0, %v2357_v7 }
  0x33   :  { %2109 = vmatprep.subr.bf16.mxu0 %v2108_v37  ;;  %2117 = vmatprep.subr.bf16.mxu1 %v2116_v41  ;;  %v599_v54 = vmax.f32 %v595_v47, 0.0  ;;  %v600_v55 = vmax.f32 %v596_v48, 0.0  ;;  %v597_v56 = vsub.f32 5.0, %v2351_v2  ;;  %v598_v57 = vsub.f32 5.0, %v2357_v7 }
  0x34   :  { %v2124_v58 = vpack.c.bf16 %v493_v51, %v492_v46  ;;  %v494_v59 = vmax.f32 %v490_v52, 0.0  ;;  %v495_v61 = vmax.f32 %v491_v53, 0.0  ;;  %v702_v63 = vsub.f32 6.0, %v2347_v0 }
  0x35   :  { %1925 = vmatmul.mubr.msk.f32.vlgmr.msra.gmra.mrb[0].mxu0 %vm61_vm0, %v2381_v49  ;;  %1936 = vmatmul.mubr.msk.f32.vlgmr.msra.gmra.mrb[0].mxu1 %vm61_vm0, %v2381_v49  ;;  %v2132_v60 = vpack.c.bf16 %v600_v55, %v599_v54  ;;  %v601_v62 = vmax.f32 %v597_v56, 0.0  ;;  %v602_v3 = vmax.f32 %v598_v57, 0.0  ;;  %v703_v4 = vsub.f32 6.0, %v2349_v1 }
  0x36   :  { %2111 = vmatpush3.bf16.msra.mxu0 %v2108_v37  ;;  %2119 = vmatpush3.bf16.msra.mxu1 %v2116_v41  ;;  %v809_v5 = vsub.f32 7.0, %v2347_v0  ;;  %v810_v6 = vsub.f32 7.0, %v2349_v1  ;;  %v704_v9 = vsub.f32 6.0, %v2351_v2  ;;  %v705_v10 = vsub.f32 6.0, %v2357_v7 }
  0x37   :  { %2113 = vmatprep.subr.bf16.mxu0 %v2112_v45  ;;  %2121 = vmatprep.subr.bf16.mxu1 %v2120_v50  ;;  %v2128_v11 = vpack.c.bf16 %v495_v61, %v494_v59  ;;  %v706_v12 = vmax.f32 %v702_v63, 0.0  ;;  %v811_v13 = vsub.f32 7.0, %v2351_v2  ;;  %v812_v14 = vsub.f32 7.0, %v2357_v7 }
  0x38   :  { %1946 = vmatprep.mubr.msk.f32.mxu0 %vm61_vm0, %v2359_v8  ;;  %1957 = vmatprep.mubr.msk.f32.mxu1 %vm61_vm0, %v2359_v8  ;;  %v2136_v15 = vpack.c.bf16 %v602_v3, %v601_v62  ;;  %v707_v16 = vmax.f32 %v703_v4, 0.0  ;;  %v813_v17 = vmax.f32 %v809_v5, 0.0  ;;  %v814_v18 = vmax.f32 %v810_v6, 0.0 }
  0x39   :  { %v708_v19 = vmax.f32 %v704_v9, 0.0  ;;  %v709_v20 = vmax.f32 %v705_v10, 0.0  ;;  %v916_v21 = vsub.f32 8.0, %v2347_v0  ;;  %v815_v22 = vmax.f32 %v811_v13, 0.0 }
  0x3a   :  { %2115 = vmatpush3.bf16.msra.mxu0 %v2112_v45  ;;  %2123 = vmatpush3.bf16.msra.mxu1 %v2120_v50  ;;  %v816_v23 = vmax.f32 %v812_v14, 0.0  ;;  %v917_v24 = vsub.f32 8.0, %v2349_v1  ;;  %v2140_v25 = vpack.c.bf16 %v707_v16, %v706_v12  ;;  %v2148_v26 = vpack.c.bf16 %v814_v18, %v813_v17 }
  0x3b   :  { %2125 = vmatprep.subr.bf16.mxu0 %v2124_v58  ;;  %2133 = vmatprep.subr.bf16.mxu1 %v2132_v60  ;;  %v1023_v27 = vsub.f32 9.0, %v2347_v0  ;;  %v1024_v28 = vsub.f32 9.0, %v2349_v1  ;;  %v2144_v29 = vpack.c.bf16 %v709_v20, %v708_v19  ;;  %v920_v30 = vmax.f32 %v916_v21, 0.0 }
  0x3c   :  { %v2152_v31 = vpack.c.bf16 %v816_v23, %v815_v22  ;;  %v921_v32 = vmax.f32 %v917_v24, 0.0  ;;  %v918_v33 = vsub.f32 8.0, %v2351_v2  ;;  %v919_v34 = vsub.f32 8.0, %v2357_v7 }
  0x3d   :  { %1947 = vmatmul.mubr.msk.f32.vlgmr.msra.gmra.mrb[2].mxu0 %vm61_vm0, %v2381_v49  ;;  %1958 = vmatmul.mubr.msk.f32.vlgmr.msra.gmra.mrb[2].mxu1 %vm61_vm0, %v2381_v49  ;;  %v1027_v35 = vmax.f32 %v1023_v27, 0.0  ;;  %v1028_v36 = vmax.f32 %v1024_v28, 0.0  ;;  %v1025_v37 = vsub.f32 9.0, %v2351_v2  ;;  %v1026_v38 = vsub.f32 9.0, %v2357_v7 }
  0x3e   :  { %2127 = vmatpush3.bf16.msra.mxu0 %v2124_v58  ;;  %2135 = vmatpush3.bf16.msra.mxu1 %v2132_v60  ;;  %v1130_v39 = vsub.f32 10.0, %v2347_v0  ;;  %v1131_v40 = vsub.f32 10.0, %v2349_v1  ;;  %v2156_v41 = vpack.c.bf16 %v921_v32, %v920_v30  ;;  %v922_v42 = vmax.f32 %v918_v33, 0.0 }
  0x3f   :  { %2129 = vmatprep.subr.bf16.mxu0 %v2128_v11  ;;  %2137 = vmatprep.subr.bf16.mxu1 %v2136_v15  ;;  %v1237_v43 = vsub.f32 11.0, %v2347_v0  ;;  %v1238_v44 = vsub.f32 11.0, %v2349_v1  ;;  %v2164_v45 = vpack.c.bf16 %v1028_v36, %v1027_v35  ;;  %v923_v46 = vmax.f32 %v919_v34, 0.0 }
  0x40   :  { %1968 = vmatprep.mubr.msk.f32.mxu0 %vm61_vm0, %v2359_v8  ;;  %1979 = vmatprep.mubr.msk.f32.mxu1 %vm61_vm0, %v2359_v8  ;;  %v1029_v47 = vmax.f32 %v1025_v37, 0.0  ;;  %v1030_v48 = vmax.f32 %v1026_v38, 0.0  ;;  %v1134_v50 = vmax.f32 %v1130_v39, 0.0  ;;  %v1135_v51 = vmax.f32 %v1131_v40, 0.0 }
  0x41   :  { %v1132_v52 = vsub.f32 10.0, %v2351_v2  ;;  %v1241_v53 = vmax.f32 %v1237_v43, 0.0  ;;  %v1242_v54 = vmax.f32 %v1238_v44, 0.0  ;;  %v1133_v55 = vsub.f32 10.0, %v2357_v7 }
  0x42   :  { %2131 = vmatpush3.bf16.msra.mxu0 %v2128_v11  ;;  %2139 = vmatpush3.bf16.msra.mxu1 %v2136_v15  ;;  %v1239_v56 = vsub.f32 11.0, %v2351_v2  ;;  %v2160_v57 = vpack.c.bf16 %v923_v46, %v922_v42  ;;  %v2168_v58 = vpack.c.bf16 %v1030_v48, %v1029_v47  ;;  %v1240_v59 = vsub.f32 11.0, %v2357_v7 }
  0x43   :  { %2141 = vmatprep.subr.bf16.mxu0 %v2140_v25  ;;  %2149 = vmatprep.subr.bf16.mxu1 %v2148_v26  ;;  %v2172_v60 = vpack.c.bf16 %v1135_v51, %v1134_v50  ;;  %v1136_v61 = vmax.f32 %v1132_v52, 0.0  ;;  %v2180_v62 = vpack.c.bf16 %v1242_v54, %v1241_v53  ;;  %v1137_v63 = vmax.f32 %v1133_v55, 0.0 }
  0x44   :  { %v1243_v3 = vmax.f32 %v1239_v56, 0.0  ;;  %v1344_v4 = vsub.f32 12.0, %v2347_v0  ;;  %v1244_v5 = vmax.f32 %v1240_v59, 0.0  ;;  %v1345_v6 = vsub.f32 12.0, %v2349_v1 }
  0x45   :  { %1969 = vmatmul.mubr.msk.f32.vlgmr.msra.gmra.mrb[4].mxu0 %vm61_vm0, %v2381_v49  ;;  %1980 = vmatmul.mubr.msk.f32.vlgmr.msra.gmra.mrb[4].mxu1 %vm61_vm0, %v2381_v49  ;;  %v1451_v9 = vsub.f32 13.0, %v2347_v0  ;;  %v1452_v10 = vsub.f32 13.0, %v2349_v1  ;;  %v1346_v11 = vsub.f32 12.0, %v2351_v2  ;;  %v1347_v12 = vsub.f32 12.0, %v2357_v7 }
  0x46   :  { %2143 = vmatpush3.bf16.msra.mxu0 %v2140_v25  ;;  %2151 = vmatpush3.bf16.msra.mxu1 %v2148_v26  ;;  %v2176_v13 = vpack.c.bf16 %v1137_v63, %v1136_v61  ;;  %v1348_v14 = vmax.f32 %v1344_v4, 0.0  ;;  %v1453_v15 = vsub.f32 13.0, %v2351_v2  ;;  %v1454_v16 = vsub.f32 13.0, %v2357_v7 }
  0x47   :  { %2145 = vmatprep.subr.bf16.mxu0 %v2144_v29  ;;  %2153 = vmatprep.subr.bf16.mxu1 %v2152_v31  ;;  %v2184_v17 = vpack.c.bf16 %v1244_v5, %v1243_v3  ;;  %v1349_v18 = vmax.f32 %v1345_v6, 0.0  ;;  %v1455_v19 = vmax.f32 %v1451_v9, 0.0  ;;  %v1456_v20 = vmax.f32 %v1452_v10, 0.0 }
  0x48   :  { %1990 = vmatprep.mubr.msk.f32.mxu0 %vm61_vm0, %v2359_v8  ;;  %2001 = vmatprep.mubr.msk.f32.mxu1 %vm61_vm0, %v2359_v8  ;;  %v1350_v21 = vmax.f32 %v1346_v11, 0.0  ;;  %v1351_v22 = vmax.f32 %v1347_v12, 0.0  ;;  %v1558_v23 = vsub.f32 14.0, %v2347_v0  ;;  %v1457_v24 = vmax.f32 %v1453_v15, 0.0 }
  0x49   :  { %v1458_v25 = vmax.f32 %v1454_v16, 0.0  ;;  %v1559_v26 = vsub.f32 14.0, %v2349_v1  ;;  %v2188_v27 = vpack.c.bf16 %v1349_v18, %v1348_v14  ;;  %v2196_v28 = vpack.c.bf16 %v1456_v20, %v1455_v19 }
  0x4a   :  { %2147 = vmatpush3.bf16.msra.mxu0 %v2144_v29  ;;  %2155 = vmatpush3.bf16.msra.mxu1 %v2152_v31  ;;  %v1665_v29 = vsub.f32 15.0, %v2347_v0  ;;  %v1666_v30 = vsub.f32 15.0, %v2349_v1  ;;  %v2192_v31 = vpack.c.bf16 %v1351_v22, %v1350_v21  ;;  %v1562_v32 = vmax.f32 %v1558_v23, 0.0 }
  0x4b   :  { %2157 = vmatprep.subr.bf16.mxu0 %v2156_v41  ;;  %2165 = vmatprep.subr.bf16.mxu1 %v2164_v45  ;;  %v2200_v33 = vpack.c.bf16 %v1458_v25, %v1457_v24  ;;  %v1563_v34 = vmax.f32 %v1559_v26, 0.0  ;;  %v1560_v35 = vsub.f32 14.0, %v2351_v2  ;;  %v1561_v36 = vsub.f32 14.0, %v2357_v7 }
  0x4c   :  { %v1669_v0 = vmax.f32 %v1665_v29, 0.0  ;;  %v1670_v1 = vmax.f32 %v1666_v30, 0.0  ;;  %v1667_v37 = vsub.f32 15.0, %v2351_v2  ;;  %v1668_v38 = vsub.f32 15.0, %v2357_v7 }
  0x4d   :  { %1991 = vmatmul.mubr.msk.f32.vlgmr.msra.gmra.mrb[6].mxu0 %vm61_vm0, %v2381_v49  ;;  %2002 = vmatmul.mubr.msk.f32.vlgmr.msra.gmra.mrb[6].mxu1 %vm61_vm0, %v2381_v49  ;;  %v2204_v39 = vpack.c.bf16 %v1563_v34, %v1562_v32  ;;  %v1564_v40 = vmax.f32 %v1560_v35, 0.0  ;;  %v1565_v42 = vmax.f32 %v1561_v36, 0.0 }
  0x4e   :  { %2159 = vmatpush3.bf16.msra.mxu0 %v2156_v41  ;;  %2167 = vmatpush3.bf16.msra.mxu1 %v2164_v45  ;;  %v2212_v41 = vpack.c.bf16 %v1670_v1, %v1669_v0  ;;  %v1671_v43 = vmax.f32 %v1667_v37, 0.0  ;;  %v1672_v44 = vmax.f32 %v1668_v38, 0.0  ;;  %v48_v45 = vlaneseq }
  0x4f   :  { %2161 = vmatprep.subr.bf16.mxu0 %v2160_v57  ;;  %2169 = vmatprep.subr.bf16.mxu1 %v2168_v58  ;;  %v2208_v2 = vpack.c.bf16 %v1565_v42, %v1564_v40 }
  0x50   :  { %2012 = vmatprep.mubr.msk.f32.mxu0 %vm61_vm0, %v2359_v8  ;;  %2023 = vmatprep.mubr.msk.f32.mxu1 %vm61_vm0, %v2359_v8  ;;  %v2216_v7 = vpack.c.bf16 %v1672_v44, %v1671_v43  ;;  %v2487_v46 = vshrl.u32 %v48_v45, 7 }
  0x52   :  { %2163 = vmatpush3.bf16.msra.mxu0 %v2160_v57  ;;  %2171 = vmatpush3.bf16.msra.mxu1 %v2168_v58  ;;  %v2490_v47 = vadd.s32 8, %v2487_v46 }
  0x53   :  { %2173 = vmatprep.subr.bf16.mxu0 %v2172_v60  ;;  %2181 = vmatprep.subr.bf16.mxu1 %v2180_v62 }
  0x55   :  { %2013 = vmatmul.mubr.msk.f32.vlgmr.msra.gmra.mrb[8].mxu0 %vm61_vm0, %v2381_v49  ;;  %2024 = vmatmul.mubr.msk.f32.vlgmr.msra.gmra.mrb[8].mxu1 %vm61_vm0, %v2381_v49 }
  0x56   :  { %2175 = vmatpush3.bf16.msra.mxu0 %v2172_v60  ;;  %2183 = vmatpush3.bf16.msra.mxu1 %v2180_v62 }
  0x57   :  { %2177 = vmatprep.subr.bf16.mxu0 %v2176_v13  ;;  %2185 = vmatprep.subr.bf16.mxu1 %v2184_v17 }
  0x58   :  { %2034 = vmatprep.mubr.msk.f32.mxu0 %vm61_vm0, %v2359_v8  ;;  %2045 = vmatprep.mubr.msk.f32.mxu1 %vm61_vm0, %v2359_v8 }
  0x5a   :  { %2179 = vmatpush3.bf16.msra.mxu0 %v2176_v13  ;;  %2187 = vmatpush3.bf16.msra.mxu1 %v2184_v17 }
  0x5b   :  { %2189 = vmatprep.subr.bf16.mxu0 %v2188_v27  ;;  %2197 = vmatprep.subr.bf16.mxu1 %v2196_v28 }
  0x5d   :  { %2035 = vmatmul.mubr.msk.f32.vlgmr.msra.gmra.mrb[10].mxu0 %vm61_vm0, %v2381_v49  ;;  %2046 = vmatmul.mubr.msk.f32.vlgmr.msra.gmra.mrb[10].mxu1 %vm61_vm0, %v2381_v49 }
  0x5e   :  { %2191 = vmatpush3.bf16.msra.mxu0 %v2188_v27  ;;  %2199 = vmatpush3.bf16.msra.mxu1 %v2196_v28 }
  0x5f   :  { %2193 = vmatprep.subr.bf16.mxu0 %v2192_v31  ;;  %2201 = vmatprep.subr.bf16.mxu1 %v2200_v33 }
  0x60   :  { %2056 = vmatprep.mubr.msk.f32.mxu0 %vm61_vm0, %v2359_v8  ;;  %2067 = vmatprep.mubr.msk.f32.mxu1 %vm61_vm0, %v2359_v8 }
  0x62   :  { %2195 = vmatpush3.bf16.msra.mxu0 %v2192_v31  ;;  %2203 = vmatpush3.bf16.msra.mxu1 %v2200_v33 }
  0x63   :  { %2205 = vmatprep.subr.bf16.mxu0 %v2204_v39  ;;  %2213 = vmatprep.subr.bf16.mxu1 %v2212_v41 }
  0x65   :  { %2057 = vmatmul.mubr.msk.f32.vlgmr.msra.gmra.mrb[12].mxu0 %vm61_vm0, %v2381_v49  ;;  %2068 = vmatmul.mubr.msk.f32.vlgmr.msra.gmra.mrb[12].mxu1 %vm61_vm0, %v2381_v49 }
  0x66   :  { %2207 = vmatpush3.bf16.msra.mxu0 %v2204_v39  ;;  %2215 = vmatpush3.bf16.msra.mxu1 %v2212_v41 }
  0x67   :  { %2209 = vmatprep.subr.bf16.mxu0 %v2208_v2  ;;  %2217 = vmatprep.subr.bf16.mxu1 %v2216_v7 }
  0x68   :  { %2078 = vmatprep.mubr.msk.f32.mxu0 %vm61_vm0, %v2359_v8  ;;  %2089 = vmatprep.mubr.msk.f32.mxu1 %vm61_vm0, %v2359_v8 }
  0x6a   :  { %2211 = vmatpush3.bf16.msra.mxu0 %v2208_v2  ;;  %2219 = vmatpush3.bf16.msra.mxu1 %v2216_v7 }
  0x6d   :  { %2079 = vmatmul.mubr.msk.f32.vlgmr.msra.gmra.mrb[14].mxu0 %vm61_vm0, %v2381_v49  ;;  %2090 = vmatmul.mubr.msk.f32.vlgmr.msra.gmra.mrb[14].mxu1 %vm61_vm0, %v2381_v49 }
 0x108   :  { %v1926_v48 = vpop.f32.mrb[0].mxu0  ;;  %v1937_v50 = vpop.f32.mrb[0].mxu1 }
 0x109   :  { %vm144_vm1 = vcmp.gt.f32.partialorder %v1926_v48, 1.0  ;;  %vm251_vm2 = vcmp.gt.f32.partialorder %v1937_v50, 1.0  ;;  %v134_v51 = vpop.f32.mrb[1].mxu0  ;;  %v241_v8 = vpop.f32.mrb[1].mxu1 }
 0x10a   :  { %v146_v52 = vsel %vm144_vm1, %v2490_v47, 16  ;;  %v253_v53 = vsel %vm251_vm2, %v2490_v47, 16  ;;  %vm143_vm3 = vcmp.gt.f32.partialorder %v134_v51, 1.0  ;;  %vm250_vm4 = vcmp.gt.f32.partialorder %v241_v8, 1.0 }
 0x10b   :  { %v145_v49 = vsel %vm143_vm3, %v2487_v46, 16  ;;  %v252_v54 = vsel %vm250_vm4, %v2487_v46, 16 }
 0x10c   :  { %vm147_vm5 = vcmp.lt.s32.totalorder %v145_v49, %v146_v52  ;;  %vm254_vm6 = vcmp.lt.s32.totalorder %v252_v54, %v253_v53 }
 0x10d   :  { %v148_v55 = vsel %vm147_vm5, %v145_v49, %v146_v52  ;;  %v255_v56 = vsel %vm254_vm6, %v252_v54, %v253_v53 }
 0x10e   :  { %v149_v57 = vrot.slane %v148_v55, 4  ;;  %v256_v58 = vrot.slane %v255_v56, 4 }
 0x110   :  { %vm150_vm7 = vcmp.lt.s32.totalorder %v148_v55, %v149_v57  ;;  %vm257_vm8 = vcmp.lt.s32.totalorder %v255_v56, %v256_v58  ;;  %v1948_v59 = vpop.f32.mrb[2].mxu0  ;;  %v1959_v60 = vpop.f32.mrb[2].mxu1 }
 0x111   :  { %v151_v61 = vsel %vm150_vm7, %v148_v55, %v149_v57  ;;  %v258_v62 = vsel %vm257_vm8, %v255_v56, %v256_v58  ;;  %vm358_vm9 = vcmp.gt.f32.partialorder %v1948_v59, 1.0  ;;  %vm465_vm10 = vcmp.gt.f32.partialorder %v1959_v60, 1.0  ;;  %v348_v63 = vpop.f32.mrb[3].mxu0  ;;  %v455_v3 = vpop.f32.mrb[3].mxu1 }
 0x112   :  { %v152_v4 = vrot.slane %v151_v61, 2  ;;  %v259_v5 = vrot.slane %v258_v62, 2  ;;  %v360_v6 = vsel %vm358_vm9, %v2490_v47, 16  ;;  %v467_v9 = vsel %vm465_vm10, %v2490_v47, 16 }
 0x113   :  { %vm357_vm11 = vcmp.gt.f32.partialorder %v348_v63, 1.0  ;;  %vm464_vm12 = vcmp.gt.f32.partialorder %v455_v3, 1.0 }
 0x114   :  { %vm153_vm13 = vcmp.lt.s32.totalorder %v151_v61, %v152_v4  ;;  %vm260_vm14 = vcmp.lt.s32.totalorder %v258_v62, %v259_v5  ;;  %v359_v10 = vsel %vm357_vm11, %v2487_v46, 16  ;;  %v466_v11 = vsel %vm464_vm12, %v2487_v46, 16 }
 0x115   :  { %v154_v12 = vsel %vm153_vm13, %v151_v61, %v152_v4  ;;  %v261_v13 = vsel %vm260_vm14, %v258_v62, %v259_v5  ;;  %vm361_vm15 = vcmp.lt.s32.totalorder %v359_v10, %v360_v6  ;;  %vm468_vm0 = vcmp.lt.s32.totalorder %v466_v11, %v467_v9 }
 0x116   :  { %v155_v14 = vrot.slane %v154_v12, 1  ;;  %v262_v15 = vrot.slane %v261_v13, 1  ;;  %v362_v16 = vsel %vm361_vm15, %v359_v10, %v360_v6  ;;  %v469_v17 = vsel %vm468_vm0, %v466_v11, %v467_v9 }
 0x117   :  { %v363_v18 = vrot.slane %v362_v16, 4  ;;  %v470_v19 = vrot.slane %v469_v17, 4 }
 0x118   :  { %vm156_vm1 = vcmp.lt.s32.totalorder %v154_v12, %v155_v14  ;;  %vm263_vm2 = vcmp.lt.s32.totalorder %v261_v13, %v262_v15  ;;  %v1970_v20 = vpop.f32.mrb[4].mxu0  ;;  %v1981_v21 = vpop.f32.mrb[4].mxu1 }
 0x119   :  { %v157_v22 = vsel %vm156_vm1, %v154_v12, %v155_v14  ;;  %v264_v23 = vsel %vm263_vm2, %v261_v13, %v262_v15  ;;  %vm364_vm3 = vcmp.lt.s32.totalorder %v362_v16, %v363_v18  ;;  %vm471_vm4 = vcmp.lt.s32.totalorder %v469_v17, %v470_v19  ;;  %v562_v24 = vpop.f32.mrb[5].mxu0  ;;  %v669_v25 = vpop.f32.mrb[5].mxu1 }
 0x11a   :  { %vm158_vm5 = vcmp.eq.s32.totalorder %v157_v22, 16  ;;  %vm265_vm6 = vcmp.eq.s32.totalorder %v264_v23, 16  ;;  %v365_v26 = vsel %vm364_vm3, %v362_v16, %v363_v18  ;;  %v472_v27 = vsel %vm471_vm4, %v469_v17, %v470_v19 }
 0x11b   :  { %v159_v28 = vsel %vm158_vm5, 0, %v157_v22  ;;  %v266_v29 = vsel %vm265_vm6, 0, %v264_v23  ;;  %v366_v30 = vrot.slane %v365_v26, 2  ;;  %v473_v31 = vrot.slane %v472_v27, 2 }
 0x11c   :  { %v160_v32 = vadd.s32 1, %v159_v28  ;;  %v267_v33 = vadd.s32 1, %v266_v29  ;;  %vm572_vm7 = vcmp.gt.f32.partialorder %v1970_v20, 1.0  ;;  %vm679_vm8 = vcmp.gt.f32.partialorder %v1981_v21, 1.0 }
 0x11d   :  { %vm367_vm9 = vcmp.lt.s32.totalorder %v365_v26, %v366_v30  ;;  %vm474_vm10 = vcmp.lt.s32.totalorder %v472_v27, %v473_v31  ;;  %v574_v34 = vsel %vm572_vm7, %v2490_v47, 16  ;;  %v681_v35 = vsel %vm679_vm8, %v2490_v47, 16 }
 0x11e   :  { %vm161_vm11 = vcmp.lt.s32.totalorder %v160_v32, 16  ;;  %vm268_vm12 = vcmp.lt.s32.totalorder %v267_v33, 16  ;;  %v368_v36 = vsel %vm367_vm9, %v365_v26, %v366_v30  ;;  %v475_v0 = vsel %vm474_vm10, %v472_v27, %v473_v31 }
 0x11f   :  { %v162_v1 = vsel %vm161_vm11, %v160_v32, 16  ;;  %v269_v37 = vsel %vm268_vm12, %v267_v33, 16  ;;  %v369_v38 = vrot.slane %v368_v36, 1  ;;  %v476_v39 = vrot.slane %v475_v0, 1 }
 0x120   :  { %v163_v40 = vcvt.s32.f32 %v162_v1  ;;  %v270_v41 = vcvt.s32.f32 %v269_v37  ;;  %vm571_vm13 = vcmp.gt.f32.partialorder %v562_v24, 1.0  ;;  %vm678_vm14 = vcmp.gt.f32.partialorder %v669_v25, 1.0  ;;  %v1992_v42 = vpop.f32.mrb[6].mxu0  ;;  %v2003_v43 = vpop.f32.mrb[6].mxu1 }
 0x121   :  { %vm370_vm15 = vcmp.lt.s32.totalorder %v368_v36, %v369_v38  ;;  %vm477_vm0 = vcmp.lt.s32.totalorder %v475_v0, %v476_v39  ;;  %v573_v44 = vsel %vm571_vm13, %v2487_v46, 16  ;;  %v680_v2 = vsel %vm678_vm14, %v2487_v46, 16  ;;  %v776_v7 = vpop.f32.mrb[7].mxu0  ;;  %v883_v45 = vpop.f32.mrb[7].mxu1 }
 0x122   :  { %164 = vst [vmem:[#allocation7] sm:$0x1] %v163_v40  ;;  %271 = vst [vmem:[#allocation7 + $0x1] sm:$0x1] %v270_v41  ;;  %v371_v48 = vsel %vm370_vm15, %v368_v36, %v369_v38  ;;  %v478_v50 = vsel %vm477_vm0, %v475_v0, %v476_v39  ;;  %vm575_vm1 = vcmp.lt.s32.totalorder %v573_v44, %v574_v34  ;;  %vm786_vm5 = vcmp.gt.f32.partialorder %v1992_v42, 1.0 }
 0x123   :  { %vm682_vm2 = vcmp.lt.s32.totalorder %v680_v2, %v681_v35  ;;  %vm372_vm3 = vcmp.eq.s32.totalorder %v371_v48, 16  ;;  %vm479_vm4 = vcmp.eq.s32.totalorder %v478_v50, 16  ;;  %v576_v51 = vsel %vm575_vm1, %v573_v44, %v574_v34 }
 0x124   :  { %v683_v8 = vsel %vm682_vm2, %v680_v2, %v681_v35  ;;  %v373_v52 = vsel %vm372_vm3, 0, %v371_v48  ;;  %v480_v53 = vsel %vm479_vm4, 0, %v478_v50  ;;  %v577_v49 = vrot.slane %v576_v51, 4 }
 0x125   :  { %v684_v54 = vrot.slane %v683_v8, 4  ;;  %v374_v55 = vadd.s32 1, %v373_v52  ;;  %v481_v56 = vadd.s32 1, %v480_v53  ;;  %vm893_vm6 = vcmp.gt.f32.partialorder %v2003_v43, 1.0 }
 0x126   :  { %vm578_vm7 = vcmp.lt.s32.totalorder %v576_v51, %v577_v49  ;;  %v788_v57 = vsel %vm786_vm5, %v2490_v47, 16  ;;  %v895_v58 = vsel %vm893_vm6, %v2490_v47, 16  ;;  %vm785_vm11 = vcmp.gt.f32.partialorder %v776_v7, 1.0 }
 0x127   :  { %vm685_vm8 = vcmp.lt.s32.totalorder %v683_v8, %v684_v54  ;;  %vm375_vm9 = vcmp.lt.s32.totalorder %v374_v55, 16  ;;  %vm482_vm10 = vcmp.lt.s32.totalorder %v481_v56, 16  ;;  %v579_v59 = vsel %vm578_vm7, %v576_v51, %v577_v49 }
 0x128   :  { %v686_v60 = vsel %vm685_vm8, %v683_v8, %v684_v54  ;;  %v376_v61 = vsel %vm375_vm9, %v374_v55, 16  ;;  %v483_v62 = vsel %vm482_vm10, %v481_v56, 16  ;;  %v580_v63 = vrot.slane %v579_v59, 2  ;;  %v2014_v4 = vpop.f32.mrb[8].mxu0  ;;  %v2025_v5 = vpop.f32.mrb[8].mxu1 }
 0x129   :  { %v687_v3 = vrot.slane %v686_v60, 2  ;;  %v377_v6 = vcvt.s32.f32 %v376_v61  ;;  %v484_v9 = vcvt.s32.f32 %v483_v62  ;;  %vm892_vm12 = vcmp.gt.f32.partialorder %v883_v45, 1.0  ;;  %v990_v10 = vpop.f32.mrb[9].mxu0  ;;  %v1097_v11 = vpop.f32.mrb[9].mxu1 }
 0x12a   :  { %vm581_vm13 = vcmp.lt.s32.totalorder %v579_v59, %v580_v63  ;;  %v787_v12 = vsel %vm785_vm11, %v2487_v46, 16  ;;  %v894_v13 = vsel %vm892_vm12, %v2487_v46, 16  ;;  %vm1000_vm1 = vcmp.gt.f32.partialorder %v2014_v4, 1.0 }
 0x12b   :  { %vm688_vm14 = vcmp.lt.s32.totalorder %v686_v60, %v687_v3  ;;  %378 = vst [vmem:[#allocation7 + $0x2] sm:$0x1] %v377_v6  ;;  %485 = vst [vmem:[#allocation7 + $0x3] sm:$0x1] %v484_v9  ;;  %v582_v14 = vsel %vm581_vm13, %v579_v59, %v580_v63  ;;  %vm789_vm15 = vcmp.lt.s32.totalorder %v787_v12, %v788_v57  ;;  %vm1107_vm2 = vcmp.gt.f32.partialorder %v2025_v5, 1.0 }
 0x12c   :  { %v689_v15 = vsel %vm688_vm14, %v686_v60, %v687_v3  ;;  %vm896_vm0 = vcmp.lt.s32.totalorder %v894_v13, %v895_v58  ;;  %v583_v16 = vrot.slane %v582_v14, 1  ;;  %v790_v18 = vsel %vm789_vm15, %v787_v12, %v788_v57 }
 0x12d   :  { %v690_v17 = vrot.slane %v689_v15, 1  ;;  %v897_v19 = vsel %vm896_vm0, %v894_v13, %v895_v58  ;;  %v791_v20 = vrot.slane %v790_v18, 4  ;;  %v1002_v22 = vsel %vm1000_vm1, %v2490_v47, 16 }
 0x12e   :  { %v898_v21 = vrot.slane %v897_v19, 4  ;;  %vm584_vm3 = vcmp.lt.s32.totalorder %v582_v14, %v583_v16  ;;  %v1109_v23 = vsel %vm1107_vm2, %v2490_v47, 16  ;;  %vm999_vm9 = vcmp.gt.f32.partialorder %v990_v10, 1.0 }
 0x12f   :  { %vm691_vm4 = vcmp.lt.s32.totalorder %v689_v15, %v690_v17  ;;  %v585_v24 = vsel %vm584_vm3, %v582_v14, %v583_v16  ;;  %vm792_vm5 = vcmp.lt.s32.totalorder %v790_v18, %v791_v20  ;;  %vm1106_vm10 = vcmp.gt.f32.partialorder %v1097_v11, 1.0 }
 0x130   :  { %v692_v25 = vsel %vm691_vm4, %v689_v15, %v690_v17  ;;  %vm899_vm6 = vcmp.lt.s32.totalorder %v897_v19, %v898_v21  ;;  %vm586_vm7 = vcmp.eq.s32.totalorder %v585_v24, 16  ;;  %v793_v26 = vsel %vm792_vm5, %v790_v18, %v791_v20  ;;  %v2036_v28 = vpop.f32.mrb[10].mxu0  ;;  %v2047_v29 = vpop.f32.mrb[10].mxu1 }
 0x131   :  { %vm693_vm8 = vcmp.eq.s32.totalorder %v692_v25, 16  ;;  %v900_v27 = vsel %vm899_vm6, %v897_v19, %v898_v21  ;;  %v587_v30 = vsel %vm586_vm7, 0, %v585_v24  ;;  %v794_v32 = vrot.slane %v793_v26, 2  ;;  %v2510_v34 = vpop.f32.mrb[11].mxu0  ;;  %v2512_v35 = vpop.f32.mrb[11].mxu1 }
 0x132   :  { %v694_v31 = vsel %vm693_vm8, 0, %v692_v25  ;;  %v901_v33 = vrot.slane %v900_v27, 2  ;;  %v588_v36 = vadd.s32 1, %v587_v30  ;;  %v1001_v1 = vsel %vm999_vm9, %v2487_v46, 16 }
 0x133   :  { %v695_v0 = vadd.s32 1, %v694_v31  ;;  %vm795_vm11 = vcmp.lt.s32.totalorder %v793_v26, %v794_v32  ;;  %v1108_v37 = vsel %vm1106_vm10, %v2487_v46, 16  ;;  %vm1003_vm15 = vcmp.lt.s32.totalorder %v1001_v1, %v1002_v22 }
 0x134   :  { %vm902_vm12 = vcmp.lt.s32.totalorder %v900_v27, %v901_v33  ;;  %vm589_vm13 = vcmp.lt.s32.totalorder %v588_v36, 16  ;;  %v796_v38 = vsel %vm795_vm11, %v793_v26, %v794_v32  ;;  %vm1110_vm0 = vcmp.lt.s32.totalorder %v1108_v37, %v1109_v23 }
 0x135   :  { %vm696_vm14 = vcmp.lt.s32.totalorder %v695_v0, 16  ;;  %v903_v39 = vsel %vm902_vm12, %v900_v27, %v901_v33  ;;  %v590_v40 = vsel %vm589_vm13, %v588_v36, 16  ;;  %v797_v42 = vrot.slane %v796_v38, 1 }
 0x136   :  { %v697_v41 = vsel %vm696_vm14, %v695_v0, 16  ;;  %v904_v43 = vrot.slane %v903_v39, 1  ;;  %v591_v44 = vcvt.s32.f32 %v590_v40  ;;  %v1004_v7 = vsel %vm1003_vm15, %v1001_v1, %v1002_v22 }
 0x137   :  { %v698_v2 = vcvt.s32.f32 %v697_v41  ;;  %vm798_vm1 = vcmp.lt.s32.totalorder %v796_v38, %v797_v42  ;;  %v1111_v45 = vsel %vm1110_vm0, %v1108_v37, %v1109_v23  ;;  %v1005_v51 = vrot.slane %v1004_v7, 4 }
 0x138   :  { %vm905_vm2 = vcmp.lt.s32.totalorder %v903_v39, %v904_v43  ;;  %592 = vst [vmem:[#allocation7 + $0x4] sm:$0x1] %v591_v44  ;;  %v799_v48 = vsel %vm798_vm1, %v796_v38, %v797_v42  ;;  %v1112_v8 = vrot.slane %v1111_v45, 4  ;;  %v2058_v52 = vpop.f32.mrb[12].mxu0  ;;  %v2069_v53 = vpop.f32.mrb[12].mxu1  ;;  %vm1214_vm5 = vcmp.gt.f32.partialorder %v2036_v28, 1.0 }
 0x139   :  { %699 = vst [vmem:[#allocation7 + $0x5] sm:$0x1] %v698_v2  ;;  %v906_v50 = vsel %vm905_vm2, %v903_v39, %v904_v43  ;;  %vm800_vm3 = vcmp.eq.s32.totalorder %v799_v48, 16  ;;  %vm1321_vm6 = vcmp.gt.f32.partialorder %v2047_v29, 1.0  ;;  %v2516_v49 = vpop.f32.mrb[13].mxu0  ;;  %v2518_v54 = vpop.f32.mrb[13].mxu1  ;;  %vm1006_vm7 = vcmp.lt.s32.totalorder %v1004_v7, %v1005_v51 }
 0x13a   :  { %vm907_vm4 = vcmp.eq.s32.totalorder %v906_v50, 16  ;;  %v801_v55 = vsel %vm800_vm3, 0, %v799_v48  ;;  %vm1113_vm8 = vcmp.lt.s32.totalorder %v1111_v45, %v1112_v8  ;;  %v1007_v59 = vsel %vm1006_vm7, %v1004_v7, %v1005_v51 }
 0x13b   :  { %v908_v56 = vsel %vm907_vm4, 0, %v906_v50  ;;  %v802_v57 = vadd.s32 1, %v801_v55  ;;  %v1114_v60 = vsel %vm1113_vm8, %v1111_v45, %v1112_v8  ;;  %v1008_v61 = vrot.slane %v1007_v59, 2 }
 0x13c   :  { %v909_v58 = vadd.s32 1, %v908_v56  ;;  %v1115_v62 = vrot.slane %v1114_v60, 2  ;;  %v1216_v63 = vsel %vm1214_vm5, %v2490_v47, 16  ;;  %v1323_v3 = vsel %vm1321_vm6, %v2490_v47, 16 }
 0x13d   :  { %vm803_vm9 = vcmp.lt.s32.totalorder %v802_v57, 16  ;;  %vm1213_vm11 = vcmp.gt.f32.partialorder %v2510_v34, 1.0  ;;  %vm1320_vm12 = vcmp.gt.f32.partialorder %v2512_v35, 1.0  ;;  %vm1009_vm13 = vcmp.lt.s32.totalorder %v1007_v59, %v1008_v61 }
 0x13e   :  { %vm910_vm10 = vcmp.lt.s32.totalorder %v909_v58, 16  ;;  %v804_v4 = vsel %vm803_vm9, %v802_v57, 16  ;;  %vm1116_vm14 = vcmp.lt.s32.totalorder %v1114_v60, %v1115_v62  ;;  %v1010_v10 = vsel %vm1009_vm13, %v1007_v59, %v1008_v61 }
 0x13f   :  { %v911_v5 = vsel %vm910_vm10, %v909_v58, 16  ;;  %v805_v6 = vcvt.s32.f32 %v804_v4  ;;  %v1117_v11 = vsel %vm1116_vm14, %v1114_v60, %v1115_v62  ;;  %v1011_v12 = vrot.slane %v1010_v10, 1 }
 0x140   :  { %v912_v9 = vcvt.s32.f32 %v911_v5  ;;  %v1118_v13 = vrot.slane %v1117_v11, 1  ;;  %v1215_v14 = vsel %vm1213_vm11, %v2487_v46, 16  ;;  %v1322_v15 = vsel %vm1320_vm12, %v2487_v46, 16  ;;  %v2526_v16 = vpop.f32.mrb[14].mxu0  ;;  %v2528_v17 = vpop.f32.mrb[14].mxu1 }
 0x141   :  { %806 = vst [vmem:[#allocation7 + $0x6] sm:$0x1] %v805_v6  ;;  %vm1217_vm15 = vcmp.lt.s32.totalorder %v1215_v14, %v1216_v63  ;;  %vm1324_vm0 = vcmp.lt.s32.totalorder %v1322_v15, %v1323_v3  ;;  %vm1428_vm1 = vcmp.gt.f32.partialorder %v2058_v52, 1.0  ;;  %vm1535_vm2 = vcmp.gt.f32.partialorder %v2069_v53, 1.0  ;;  %v2530_v18 = vpop.f32.mrb[15].mxu0  ;;  %v2532_v19 = vpop.f32.mrb[15].mxu1 }
 0x142   :  { %913 = vst [vmem:[#allocation7 + $0x7] sm:$0x1] %v912_v9  ;;  %vm1012_vm3 = vcmp.lt.s32.totalorder %v1010_v10, %v1011_v12  ;;  %vm1119_vm4 = vcmp.lt.s32.totalorder %v1117_v11, %v1118_v13  ;;  %v1218_v20 = vsel %vm1217_vm15, %v1215_v14, %v1216_v63  ;;  %v1325_v21 = vsel %vm1324_vm0, %v1322_v15, %v1323_v3 }
 0x143   :  { %v1013_v22 = vsel %vm1012_vm3, %v1010_v10, %v1011_v12  ;;  %v1120_v23 = vsel %vm1119_vm4, %v1117_v11, %v1118_v13  ;;  %v1219_v24 = vrot.slane %v1218_v20, 4  ;;  %v1326_v25 = vrot.slane %v1325_v21, 4 }
 0x144   :  { %vm1014_vm5 = vcmp.eq.s32.totalorder %v1013_v22, 16  ;;  %vm1121_vm6 = vcmp.eq.s32.totalorder %v1120_v23, 16  ;;  %v1430_v26 = vsel %vm1428_vm1, %v2490_v47, 16  ;;  %v1537_v27 = vsel %vm1535_vm2, %v2490_v47, 16 }
 0x145   :  { %v1015_v28 = vsel %vm1014_vm5, 0, %v1013_v22  ;;  %v1122_v29 = vsel %vm1121_vm6, 0, %v1120_v23  ;;  %vm1220_vm7 = vcmp.lt.s32.totalorder %v1218_v20, %v1219_v24  ;;  %vm1327_vm8 = vcmp.lt.s32.totalorder %v1325_v21, %v1326_v25 }
 0x146   :  { %v1016_v30 = vadd.s32 1, %v1015_v28  ;;  %v1123_v31 = vadd.s32 1, %v1122_v29  ;;  %v1221_v32 = vsel %vm1220_vm7, %v1218_v20, %v1219_v24  ;;  %v1328_v33 = vsel %vm1327_vm8, %v1325_v21, %v1326_v25 }
 0x147   :  { %v1222_v34 = vrot.slane %v1221_v32, 2  ;;  %v1329_v35 = vrot.slane %v1328_v33, 2  ;;  %vm1427_vm9 = vcmp.gt.f32.partialorder %v2516_v49, 1.0  ;;  %vm1534_vm10 = vcmp.gt.f32.partialorder %v2518_v54, 1.0 }
 0x148   :  { %vm1017_vm11 = vcmp.lt.s32.totalorder %v1016_v30, 16  ;;  %vm1124_vm12 = vcmp.lt.s32.totalorder %v1123_v31, 16  ;;  %v1429_v36 = vsel %vm1427_vm9, %v2487_v46, 16  ;;  %v1536_v0 = vsel %vm1534_vm10, %v2487_v46, 16 }
 0x149   :  { %v1018_v1 = vsel %vm1017_vm11, %v1016_v30, 16  ;;  %v1125_v37 = vsel %vm1124_vm12, %v1123_v31, 16  ;;  %vm1223_vm13 = vcmp.lt.s32.totalorder %v1221_v32, %v1222_v34  ;;  %vm1330_vm14 = vcmp.lt.s32.totalorder %v1328_v33, %v1329_v35 }
 0x14a   :  { %v1019_v38 = vcvt.s32.f32 %v1018_v1  ;;  %v1126_v39 = vcvt.s32.f32 %v1125_v37  ;;  %v1224_v40 = vsel %vm1223_vm13, %v1221_v32, %v1222_v34  ;;  %v1331_v41 = vsel %vm1330_vm14, %v1328_v33, %v1329_v35 }
 0x14b   :  { %v1225_v42 = vrot.slane %v1224_v40, 1  ;;  %v1332_v43 = vrot.slane %v1331_v41, 1  ;;  %vm1431_vm15 = vcmp.lt.s32.totalorder %v1429_v36, %v1430_v26  ;;  %vm1538_vm0 = vcmp.lt.s32.totalorder %v1536_v0, %v1537_v27 }
 0x14c   :  { %1020 = vst [vmem:[#allocation7 + $0x8] sm:$0x1] %v1019_v38  ;;  %1127 = vst [vmem:[#allocation7 + $0x9] sm:$0x1] %v1126_v39  ;;  %v1432_v44 = vsel %vm1431_vm15, %v1429_v36, %v1430_v26  ;;  %v1539_v2 = vsel %vm1538_vm0, %v1536_v0, %v1537_v27  ;;  %vm1642_vm3 = vcmp.gt.f32.partialorder %v2526_v16, 1.0  ;;  %vm1749_vm4 = vcmp.gt.f32.partialorder %v2528_v17, 1.0 }
 0x14d   :  { %vm1226_vm1 = vcmp.lt.s32.totalorder %v1224_v40, %v1225_v42  ;;  %vm1333_vm2 = vcmp.lt.s32.totalorder %v1331_v41, %v1332_v43  ;;  %v1433_v7 = vrot.slane %v1432_v44, 4  ;;  %v1540_v45 = vrot.slane %v1539_v2, 4 }
 0x14e   :  { %v1227_v48 = vsel %vm1226_vm1, %v1224_v40, %v1225_v42  ;;  %v1334_v50 = vsel %vm1333_vm2, %v1331_v41, %v1332_v43  ;;  %v1644_v57 = vsel %vm1642_vm3, %v2490_v47, 16  ;;  %v1751_v58 = vsel %vm1749_vm4, %v2490_v47, 16 }
 0x14f   :  { %vm1228_vm5 = vcmp.eq.s32.totalorder %v1227_v48, 16  ;;  %vm1335_vm6 = vcmp.eq.s32.totalorder %v1334_v50, 16  ;;  %vm1434_vm7 = vcmp.lt.s32.totalorder %v1432_v44, %v1433_v7  ;;  %vm1541_vm8 = vcmp.lt.s32.totalorder %v1539_v2, %v1540_v45 }
 0x150   :  { %v1229_v51 = vsel %vm1228_vm5, 0, %v1227_v48  ;;  %v1336_v8 = vsel %vm1335_vm6, 0, %v1334_v50  ;;  %v1435_v52 = vsel %vm1434_vm7, %v1432_v44, %v1433_v7  ;;  %v1542_v53 = vsel %vm1541_vm8, %v1539_v2, %v1540_v45 }
 0x151   :  { %v1230_v49 = vadd.s32 1, %v1229_v51  ;;  %v1337_v54 = vadd.s32 1, %v1336_v8  ;;  %v1436_v55 = vrot.slane %v1435_v52, 2  ;;  %v1543_v56 = vrot.slane %v1542_v53, 2 }
 0x152   :  { %vm1641_vm9 = vcmp.gt.f32.partialorder %v2530_v18, 1.0  ;;  %vm1748_vm10 = vcmp.gt.f32.partialorder %v2532_v19, 1.0 }
 0x153   :  { %vm1231_vm11 = vcmp.lt.s32.totalorder %v1230_v49, 16  ;;  %vm1338_vm12 = vcmp.lt.s32.totalorder %v1337_v54, 16  ;;  %vm1437_vm13 = vcmp.lt.s32.totalorder %v1435_v52, %v1436_v55  ;;  %vm1544_vm14 = vcmp.lt.s32.totalorder %v1542_v53, %v1543_v56 }
 0x154   :  { %v1232_v59 = vsel %vm1231_vm11, %v1230_v49, 16  ;;  %v1339_v60 = vsel %vm1338_vm12, %v1337_v54, 16  ;;  %v1438_v61 = vsel %vm1437_vm13, %v1435_v52, %v1436_v55  ;;  %v1545_v62 = vsel %vm1544_vm14, %v1542_v53, %v1543_v56 }
 0x155   :  { %v1233_v63 = vcvt.s32.f32 %v1232_v59  ;;  %v1340_v3 = vcvt.s32.f32 %v1339_v60  ;;  %v1439_v4 = vrot.slane %v1438_v61, 1  ;;  %v1546_v5 = vrot.slane %v1545_v62, 1 }
 0x156   :  { %v1643_v6 = vsel %vm1641_vm9, %v2487_v46, 16  ;;  %v1750_v47 = vsel %vm1748_vm10, %v2487_v46, 16 }
 0x157   :  { %1234 = vst [vmem:[#allocation7 + $0xa] sm:$0x1] %v1233_v63  ;;  %1341 = vst [vmem:[#allocation7 + $0xb] sm:$0x1] %v1340_v3  ;;  %vm1440_vm15 = vcmp.lt.s32.totalorder %v1438_v61, %v1439_v4  ;;  %vm1547_vm0 = vcmp.lt.s32.totalorder %v1545_v62, %v1546_v5  ;;  %vm1645_vm1 = vcmp.lt.s32.totalorder %v1643_v6, %v1644_v57 }
 0x158   :  { %vm1752_vm2 = vcmp.lt.s32.totalorder %v1750_v47, %v1751_v58  ;;  %v1441_v9 = vsel %vm1440_vm15, %v1438_v61, %v1439_v4  ;;  %v1548_v10 = vsel %vm1547_vm0, %v1545_v62, %v1546_v5  ;;  %v1646_v11 = vsel %vm1645_vm1, %v1643_v6, %v1644_v57 }
 0x159   :  { %v1753_v12 = vsel %vm1752_vm2, %v1750_v47, %v1751_v58  ;;  %vm1442_vm3 = vcmp.eq.s32.totalorder %v1441_v9, 16  ;;  %vm1549_vm4 = vcmp.eq.s32.totalorder %v1548_v10, 16  ;;  %v1647_v13 = vrot.slane %v1646_v11, 4 }
 0x15a   :  { %v1754_v14 = vrot.slane %v1753_v12, 4  ;;  %v1443_v15 = vsel %vm1442_vm3, 0, %v1441_v9  ;;  %v1550_v16 = vsel %vm1549_vm4, 0, %v1548_v10 }
 0x15b   :  { %v1444_v17 = vadd.s32 1, %v1443_v15  ;;  %v1551_v18 = vadd.s32 1, %v1550_v16  ;;  %vm1648_vm5 = vcmp.lt.s32.totalorder %v1646_v11, %v1647_v13 }
 0x15c   :  { %vm1755_vm6 = vcmp.lt.s32.totalorder %v1753_v12, %v1754_v14  ;;  %v1649_v46 = vsel %vm1648_vm5, %v1646_v11, %v1647_v13 }
 0x15d   :  { %v1756_v19 = vsel %vm1755_vm6, %v1753_v12, %v1754_v14  ;;  %vm1445_vm7 = vcmp.lt.s32.totalorder %v1444_v17, 16  ;;  %vm1552_vm8 = vcmp.lt.s32.totalorder %v1551_v18, 16  ;;  %v1650_v20 = vrot.slane %v1649_v46, 2 }
 0x15e   :  { %v1757_v21 = vrot.slane %v1756_v19, 2  ;;  %v1446_v22 = vsel %vm1445_vm7, %v1444_v17, 16  ;;  %v1553_v23 = vsel %vm1552_vm8, %v1551_v18, 16 }
 0x15f   :  { %v1447_v24 = vcvt.s32.f32 %v1446_v22  ;;  %v1554_v25 = vcvt.s32.f32 %v1553_v23  ;;  %vm1651_vm9 = vcmp.lt.s32.totalorder %v1649_v46, %v1650_v20 }
 0x160   :  { %vm1758_vm10 = vcmp.lt.s32.totalorder %v1756_v19, %v1757_v21  ;;  %v1652_v26 = vsel %vm1651_vm9, %v1649_v46, %v1650_v20 }
 0x161   :  { %v1759_v27 = vsel %vm1758_vm10, %v1756_v19, %v1757_v21  ;;  %1448 = vst [vmem:[#allocation7 + $0xc] sm:$0x1] %v1447_v24  ;;  %1555 = vst [vmem:[#allocation7 + $0xd] sm:$0x1] %v1554_v25  ;;  %v1653_v28 = vrot.slane %v1652_v26, 1 }
 0x162   :  { %v1760_v29 = vrot.slane %v1759_v27, 1 }
 0x163   :  { %vm1654_vm11 = vcmp.lt.s32.totalorder %v1652_v26, %v1653_v28 }
 0x164   :  { %vm1761_vm12 = vcmp.lt.s32.totalorder %v1759_v27, %v1760_v29  ;;  %v1655_v30 = vsel %vm1654_vm11, %v1652_v26, %v1653_v28 }
 0x165   :  { %v1762_v31 = vsel %vm1761_vm12, %v1759_v27, %v1760_v29  ;;  %vm1656_vm13 = vcmp.eq.s32.totalorder %v1655_v30, 16 }
 0x166   :  { %vm1763_vm14 = vcmp.eq.s32.totalorder %v1762_v31, 16  ;;  %v1657_v32 = vsel %vm1656_vm13, 0, %v1655_v30 }
 0x167   :  { %v1764_v33 = vsel %vm1763_vm14, 0, %v1762_v31  ;;  %v1658_v34 = vadd.s32 1, %v1657_v32 }
 0x168   :  { %v1765_v35 = vadd.s32 1, %v1764_v33 }
 0x169   :  { %vm1659_vm15 = vcmp.lt.s32.totalorder %v1658_v34, 16 }
 0x16a   :  { %vm1766_vm0 = vcmp.lt.s32.totalorder %v1765_v35, 16  ;;  %v1660_v36 = vsel %vm1659_vm15, %v1658_v34, 16 }
 0x16b   :  { %v1767_v0 = vsel %vm1766_vm0, %v1765_v35, 16  ;;  %v1661_v1 = vcvt.s32.f32 %v1660_v36 }
 0x16c   :  { %v1768_v37 = vcvt.s32.f32 %v1767_v0 }
 0x16d   :  { %1662 = vst [vmem:[#allocation7 + $0xe] sm:$0x1] %v1661_v1 }
 0x16e   :  { %1769 = vst [vmem:[#allocation7 + $0xf] sm:$0x1] %v1768_v37 }
 0x16f   :  { %2280 = shalt.err (!%p2277_p6)
}
 0x170   :  { %s2281_s10 = scalar_lea.hbm %s2565_s2, 256 }
 0x171   :  { %p2282_p7 = scmp.ne.s32.totalorder %s2565_s2, %s2281_s10  ;;  %p2285_p8 = scmp.lt.u32.totalorder %s2281_s10, %s2565_s2 }
 0x173   :  { %p2287_p9 = pnand %p2285_p8, %p2282_p7 }
 0x175   :  { %2290 = shalt.err (!%p2287_p9)
}
 0x176   :  { %1781 = dma.vmem_to_hbm [thread:$0]  %s1776_s6, 256, %s2565_s2, [#allocation4], %s2298_s19, %s2298_s19, %s2299_s20  }
 0x177   :  { %2295 = dma.done.wait [#allocation4], 256  }
 0x178   :  { %2296 = vsyncadd [#allocation4], 4294967040 }
 0x179   :  { %1785 = vsyncpa [#allocation3], 1 }
 0x17a   :  { %1786 = vsyncpa [#allocation6], 1 }
 0x17b   :  { %1787 = vsyncpa [#allocation4], 1 }

</bundles_post_ra>
